<compile_context>
chip_gen: v5e
topology: v5e:2x2
jax: 0.10.0
libtpu: 0.0.40
codegen_flags: <defaults>
</compile_context>

<pallas_src>
from dataclasses import dataclass

import jax
import jax.numpy as jnp
from jax.experimental import pallas as pl
from jax.experimental.pallas import tpu as pltpu

_BN_EPS = 1e-5


# ---------------------------------------------------------------------------
# Fused Pallas kernel: whole CNN forward pass in a single pallas_call.
# ---------------------------------------------------------------------------
def cnn_fused_kernel(x_ref,
                     w1_ref, b1_ref, w2_ref, b2_ref, w3_ref, b3_ref,
                     w4_ref, b4_ref, w5_ref, b5_ref,
                     fc1w_ref, fc1b_ref, fc2w_ref, fc2b_ref, fc3w_ref, fc3b_ref,
                     out_ref, pad_ref):
    B, IMG, _ = x_ref.shape            # activations are (B, H, W*C), lane-dense (128 lanes)

    def conv_bn_relu(a, w_ref, b_ref, pad, dil):
        # a: (B, IMG, IMG*cin) f32.  w_ref: (3*IMG*cin, IMG*cout) bf16 banded weights
        # (3 vertical taps stacked along K; horizontal taps + horizontal zero-pad folded
        # into a tri-block-banded matrix over image columns).  b_ref: (1, IMG*cout) f32.
        cin = w_ref.shape[0] // (3 * IMG)
        cout = w_ref.shape[1] // IMG
        L = IMG * cin
        # Zero only the vertical halo rows actually read by this layer; the interior is
        # overwritten right below, so every row/lane read this layer is freshly written
        # (no stale data from a previous, larger padded region can leak in).
        pad_ref[:, 0:pad, 0:L] = jnp.zeros((B, pad, L), jnp.float32)
        pad_ref[:, pad + IMG:IMG + 2 * pad, 0:L] = jnp.zeros((B, pad, L), jnp.float32)
        pad_ref[:, pad:pad + IMG, 0:L] = a
        # Lane offset 0, full-width (128-lane) aligned reads; one MXU matmul (K = 3*L).
        patch = jnp.concatenate(
            [pad_ref[:, i * dil:i * dil + IMG, 0:L] for i in range(3)], axis=-1)
        acc = jnp.dot(patch.reshape(B * IMG, 3 * L).astype(jnp.bfloat16),
                      w_ref[...], preferred_element_type=jnp.float32)
        y = jnp.maximum(acc + b_ref[...], 0.0)          # folded BatchNorm2d + ReLU (f32)
        return y.reshape(B, IMG, IMG * cout)

    a = conv_bn_relu(x_ref[...], w1_ref, b1_ref, 1, 1)
    a = conv_bn_relu(a, w2_ref, b2_ref, 1, 1)
    a = conv_bn_relu(a, w3_ref, b3_ref, 1, 1)
    # nn.Dropout(p_dropout_1): identity in eval mode
    a = conv_bn_relu(a, w4_ref, b4_ref, 2, 2)           # dilation=2, padding=2
    a = conv_bn_relu(a, w5_ref, b5_ref, 1, 1)           # stride-2 conv computed at stride 1;
    # nn.Dropout(p_dropout_2): identity in eval mode    # row/col subsampling folded into fc1w

    # dense1: gather the IMG/2 even rows (static slices, lane-aligned concat) into one
    # (B, (IMG/2)*IMG*c3) operand; fc1w already has the zero odd-row blocks removed and
    # the PyTorch (C,H,W) flatten + column subsample folded in -> single matmul.
    d1_in = jnp.concatenate([a[:, 2 * r, :] for r in range(IMG // 2)], axis=-1)
    h1 = jnp.dot(d1_in.astype(jnp.bfloat16), fc1w_ref[...],
                 preferred_element_type=jnp.float32)
    h1 = jnp.maximum(h1 + fc1b_ref[...], 0.0)           # linear + folded BN1d + ReLU
    h2 = jnp.dot(h1.astype(jnp.bfloat16), fc2w_ref[...],
                 preferred_element_type=jnp.float32)
    h2 = jnp.maximum(h2 + fc2b_ref[...], 0.0)
    out_ref[...] = jnp.dot(h2.astype(jnp.bfloat16), fc3w_ref[...],
                           preferred_element_type=jnp.float32) + fc3b_ref[...]


# ---------------------------------------------------------------------------
# Wrapper: one pallas_call for the whole forward pass.
# ---------------------------------------------------------------------------
def to_lane_dense(x_nchw, c1):
    # NCHW -> lane-dense (B, H, W*c1); the single gray channel sits in slot 0 of each
    # c1-wide lane group (conv1's banded weights are zero elsewhere).
    B, _, img, _ = x_nchw.shape
    x = jnp.transpose(x_nchw, (0, 2, 3, 1))                 # (B, H, W, 1)
    x = jnp.pad(x, ((0, 0), (0, 0), (0, 0), (0, c1 - 1)))   # (B, H, W, c1)
    return x.reshape(B, img, img * c1)


def cnn_forward(x_nchw, prep):
    B, c_in, img, img_w = x_nchw.shape
    assert c_in == 1 and img == img_w and img % 2 == 0
    x = to_lane_dense(x_nchw, prep['c1'])
    hp, lp = prep['scratch']
    # Whole network in a single grid step (~0.6 MiB of bf16 weights + ~20 KiB scratch).
    # For large batches: add a grid over batch, give the weights index_maps returning a
    # constant block (VMEM-resident), size batch tiles so M = TB*IMG >= 256, and mark the
    # batch axis "parallel" (megacore on v7x).  Pointless at B=2, so not done here.
    return pl.pallas_call(
        cnn_fused_kernel,
        out_shape=jax.ShapeDtypeStruct((B, 3), jnp.float32),
        scratch_shapes=[pltpu.VMEM((B, hp, lp), jnp.float32)],
    )(x, *prep['args'])


# ---------------------------------------------------------------------------
# Parameters (deterministic synthetic init mirroring the PyTorch module) and
# one-time preparation (BN folding + banded / lane-dense weight expansion + bf16 cast).
# ---------------------------------------------------------------------------
@dataclass
class ArchitectureParams:
    cnet_1_channels_out: int = 8
    cnet_2_channels_out: int = 8
    cnet_3_channels_out: int = 8
    dense_1_out: int = 32
    dense_2_out: int = 16
    p_dropout_1: float = 0.1   # identity in eval mode
    p_dropout_2: float = 0.1   # identity in eval mode


def init_raw_params(key, ap: ArchitectureParams, img_size: int):
    c1, c2, c3 = ap.cnet_1_channels_out, ap.cnet_2_channels_out, ap.cnet_3_channels_out
    flat = img_size * img_size * c3 // 4

    def conv_block_params(key, cin, cout):
        ks = jax.random.split(key, 6)
        return dict(
            w=jax.random.normal(ks[0], (3, 3, cin, cout), jnp.float32) * 0.1,
            b=jax.random.normal(ks[1], (cout,), jnp.float32) * 0.05,
            gamma=1.0 + 0.1 * jax.random.normal(ks[2], (cout,), jnp.float32),
            beta=0.05 * jax.random.normal(ks[3], (cout,), jnp.float32),
            mean=0.05 * jax.random.normal(ks[4], (cout,), jnp.float32),
            var=1.0 + 0.1 * jnp.abs(jax.random.normal(ks[5], (cout,), jnp.float32)))

    def dense_block_params(key, fin, fout, with_bn=True):
        ks = jax.random.split(key, 6)
        p = dict(w=jax.random.normal(ks[0], (fin, fout), jnp.float32) * (fin ** -0.5),
                 b=jax.random.normal(ks[1], (fout,), jnp.float32) * 0.05)
        if with_bn:
            p.update(
                gamma=1.0 + 0.1 * jax.random.normal(ks[2], (fout,), jnp.float32),
                beta=0.05 * jax.random.normal(ks[3], (fout,), jnp.float32),
                mean=0.05 * jax.random.normal(ks[4], (fout,), jnp.float32),
                var=1.0 + 0.1 * jnp.abs(jax.random.normal(ks[5], (fout,), jnp.float32)))
        return p

    keys = jax.random.split(key, 8)
    return {
        'conv1': conv_block_params(keys[0], 1, c1),
        'conv2': conv_block_params(keys[1], c1, c1),
        'conv3': conv_block_params(keys[2], c1, c2),
        'conv4': conv_block_params(keys[3], c2, c3),   # dilation=2
        'conv5': conv_block_params(keys[4], c3, c3),   # stride=2
        'dense1': dense_block_params(keys[5], flat, ap.dense_1_out),
        'dense2': dense_block_params(keys[6], ap.dense_1_out, ap.dense_2_out),
        'final': dense_block_params(keys[7], ap.dense_2_out, 3, with_bn=False),
    }


def prepare_params(raw, ap: ArchitectureParams, img: int):
    c1, c2, c3 = ap.cnet_1_channels_out, ap.cnet_2_channels_out, ap.cnet_3_channels_out

    def fold_conv(p):
        s = p['gamma'] / jnp.sqrt(p['var'] + _BN_EPS)
        return p['w'] * s, p['beta'] + (p['b'] - p['mean']) * s

    def fold_dense(p):
        s = p['gamma'] / jnp.sqrt(p['var'] + _BN_EPS)
        return p['w'] * s, p['b'] * s + p['beta'] - p['mean'] * s

    def band_conv(w_f, b_f, *, pad, dil):
        # (3,3,cin,cout) BN-folded -> K-banded (3*img*cin, img*cout) bf16.
        # K index = i*(img*cin) + v*cin + c  (vertical tap i, input column v, channel c);
        # N index = w_out*cout + f.  Horizontal taps j and the horizontal zero-padding
        # are folded in: contribution w_f[i,j,c,f] lands at v = w_out + j*dil - pad,
        # and out-of-range columns simply get no entry (free zero-pad).
        _, _, cin, cout = w_f.shape
        v = jnp.arange(img)[:, None]        # input column
        w_out = jnp.arange(img)[None, :]    # output column
        banded = jnp.zeros((3, img, cin, img, cout), jnp.float32)
        for j in range(3):
            sel = (v == w_out + j * dil - pad).astype(jnp.float32)   # (img, img)
            banded = banded + jnp.einsum('vw,icf->ivcwf', sel, w_f[:, j])
        banded = banded.reshape(3 * img * cin, img * cout)
        return banded.astype(jnp.bfloat16), jnp.tile(b_f, img).reshape(1, img * cout)

    # conv1: fold BN, then zero-pad cin 1 -> c1 (the input channels are zero-padded too)
    w1, b1 = fold_conv(raw['conv1'])
    w1 = jnp.pad(w1, ((0, 0), (0, 0), (0, c1 - 1), (0, 0)))
    conv_folded = [
        (w1, b1, 1, 1),
        (*fold_conv(raw['conv2']), 1, 1),
        (*fold_conv(raw['conv3']), 1, 1),
        (*fold_conv(raw['conv4']), 2, 2),
        (*fold_conv(raw['conv5']), 1, 1),
    ]
    conv = [(*band_conv(w, b, pad=p, dil=d), p, d) for (w, b, p, d) in conv_folded]

    # dense1: fold BN, then fold conv5's stride-2 subsampling and the PyTorch (C,H,W)
    # flatten permutation into the weight matrix; keep only the even-row blocks
    # (odd rows of the stride-1 conv5 output never contribute).
    d1w, d1b = fold_dense(raw['dense1'])
    hs = img // 2
    d1 = d1w.shape[1]
    w_hwc = jnp.transpose(d1w.reshape(c3, hs, hs, d1), (1, 2, 0, 3))     # (h_s, w_s, c3, d1)
    w_full = jnp.zeros((hs, img, c3, d1), jnp.float32).at[:, 0::2].set(w_hwc)
    fc1w = w_full.reshape(hs * img * c3, d1).astype(jnp.bfloat16)        # (hs*img*c3, d1)

    d2w, d2b = fold_dense(raw['dense2'])
    dense = [(fc1w, d1b.reshape(1, -1)),
             (d2w.astype(jnp.bfloat16), d2b.reshape(1, -1)),
             (raw['final']['w'].astype(jnp.bfloat16), raw['final']['b'].reshape(1, -1))]

    args = []
    for w, b, _, _ in conv:
        args += [w, b]
    for w, b in dense:
        args += [w, b]

    max_pad = max(p for _, _, p, _ in conv)
    max_cin = max(w.shape[0] // (3 * img) for w, _, _, _ in conv)
    return {'args': args, 'conv': conv, 'dense': dense, 'c1': c1,
            'scratch': (img + 2 * max_pad, img * max_cin)}


# ---------------------------------------------------------------------------
# Pure-JAX emulation of the exact kernel math (same bf16 weights, f32 accumulation).
# Used for a tight lowering check.
# ---------------------------------------------------------------------------
def cnn_prepared_ref(x_lane, prep):
    B, img, _ = x_lane.shape
    a = x_lane
    for w, b, pad, dil in prep['conv']:
        cin = w.shape[0] // (3 * img)
        cout = w.shape[1] // img
        ap = jnp.pad(a, ((0, 0), (pad, pad), (0, 0)))
        patch = jnp.concatenate([ap[:, i * dil:i * dil + img, :] for i in range(3)], axis=-1)
        acc = jnp.dot(patch.reshape(B * img, 3 * img * cin).astype(jnp.bfloat16), w,
                      preferred_element_type=jnp.float32)
        a = jnp.maximum(acc + b, 0.0).reshape(B, img, img * cout)
    h = jnp.concatenate([a[:, 2 * r, :] for r in range(img // 2)], axis=-1)
    (w1d, b1d), (w2d, b2d), (w3d, b3d) = prep['dense']
    h = jnp.maximum(jnp.dot(h.astype(jnp.bfloat16), w1d,
                            preferred_element_type=jnp.float32) + b1d, 0.0)
    h = jnp.maximum(jnp.dot(h.astype(jnp.bfloat16), w2d,
                            preferred_element_type=jnp.float32) + b2d, 0.0)
    return jnp.dot(h.astype(jnp.bfloat16), w3d,
                   preferred_element_type=jnp.float32) + b3d


# ---------------------------------------------------------------------------
# Pure-JAX (XLA) f32 reference of the original PyTorch module (eval mode).
# ---------------------------------------------------------------------------
def cnn_reference(x_nchw, raw):
    hi = jax.lax.Precision.HIGHEST

    def conv_bn_relu(x, p, *, stride=1, dilation=1, padding=1):
        w = jnp.transpose(p['w'], (3, 2, 0, 1))                      # OIHW
        y = jax.lax.conv_general_dilated(
            x, w, window_strides=(stride, stride),
            padding=((padding, padding), (padding, padding)),
            rhs_dilation=(dilation, dilation),
            dimension_numbers=('NCHW', 'OIHW', 'NCHW'), precision=hi)
        y = y + p['b'][None, :, None, None]
        s = p['gamma'] / jnp.sqrt(p['var'] + _BN_EPS)
        y = (y - p['mean'][None, :, None, None]) * s[None, :, None, None] \
            + p['beta'][None, :, None, None]
        return jnp.maximum(y, 0.0)

    def dense_bn_relu(x, p):
        y = jnp.dot(x, p['w'], precision=hi) + p['b']
        s = p['gamma'] / jnp.sqrt(p['var'] + _BN_EPS)
        return jnp.maximum((y - p['mean']) * s + p['beta'], 0.0)

    x = conv_bn_relu(x_nchw, raw['conv1'])
    x = conv_bn_relu(x, raw['conv2'])
    x = conv_bn_relu(x, raw['conv3'])
    x = conv_bn_relu(x, raw['conv4'], dilation=2, padding=2)
    x = conv_bn_relu(x, raw['conv5'], stride=2, padding=1)
    x = x.reshape(x.shape[0], -1)                                    # PyTorch (C,H,W) flatten
    x = dense_bn_relu(x, raw['dense1'])
    x = dense_bn_relu(x, raw['dense2'])
    return jnp.dot(x, raw['final']['w'], precision=hi) + raw['final']['b']


if __name__ == "__main__":
    ap = ArchitectureParams()
    img_size = 16
    key = jax.random.PRNGKey(0)
    k_params, k_x = jax.random.split(key)
    raw = init_raw_params(k_params, ap, img_size)
    prep = prepare_params(raw, ap, img_size)
    x = jax.random.normal(k_x, (2, 1, img_size, img_size), jnp.float32)  # NCHW like PyTorch

    out = jax.block_until_ready(cnn_forward(x, prep))
    assert out.shape == (2, 3), out.shape
    assert bool(jnp.all(jnp.isfinite(out)))

    # (1) Tight check vs. an XLA emulation of the exact kernel math (same bf16 weights,
    #     f32 accumulation) -> catches any Pallas lowering / indexing bug.
    ref_prep = jax.block_until_ready(cnn_prepared_ref(to_lane_dense(x, prep['c1']), prep))
    assert bool(jnp.allclose(out, ref_prep, atol=5e-3, rtol=5e-3))

    # (2) Check vs. the original all-f32 module semantics; tolerance sized for the bf16
    #     weight quantization (a folding / flatten-permutation bug would blow way past it).
    ref = jax.block_until_ready(cnn_reference(x, raw))
    assert bool(jnp.allclose(out, ref, atol=5e-2, rtol=5e-2))

    print("KERNEL_OK")
</pallas_src>

<mosaic_0001>
module attributes {stable_mosaic.version = 11 : i64} {
  func.func @cnn_fused_kernel(%arg0: memref<2x16x128xf32, #tpu.memory_space<vmem>>, %arg1: memref<384x128xbf16, #tpu.memory_space<vmem>>, %arg2: memref<1x128xf32, #tpu.memory_space<vmem>>, %arg3: memref<384x128xbf16, #tpu.memory_space<vmem>>, %arg4: memref<1x128xf32, #tpu.memory_space<vmem>>, %arg5: memref<384x128xbf16, #tpu.memory_space<vmem>>, %arg6: memref<1x128xf32, #tpu.memory_space<vmem>>, %arg7: memref<384x128xbf16, #tpu.memory_space<vmem>>, %arg8: memref<1x128xf32, #tpu.memory_space<vmem>>, %arg9: memref<384x128xbf16, #tpu.memory_space<vmem>>, %arg10: memref<1x128xf32, #tpu.memory_space<vmem>>, %arg11: memref<1024x32xbf16, #tpu.memory_space<vmem>>, %arg12: memref<1x32xf32, #tpu.memory_space<vmem>>, %arg13: memref<32x16xbf16, #tpu.memory_space<vmem>>, %arg14: memref<1x16xf32, #tpu.memory_space<vmem>>, %arg15: memref<16x3xbf16, #tpu.memory_space<vmem>>, %arg16: memref<1x3xf32, #tpu.memory_space<vmem>>, %arg17: memref<2x3xf32, #tpu.memory_space<vmem>>, %arg18: memref<2x20x128xf32, #tpu.memory_space<vmem>>) attributes {dimension_semantics = [], scalar_prefetch = 0 : i64, scratch_operands = 1 : i64, tpu.core_type = #tpu.core_type<tc>} {
    %c0 = arith.constant 0 : index
    %c0_0 = arith.constant 0 : index
    %c0_1 = arith.constant 0 : index
    %0 = vector.load %arg0[%c0, %c0_0, %c0_1] : memref<2x16x128xf32, #tpu.memory_space<vmem>>, vector<2x16x128xf32>
    %cst = arith.constant 0.000000e+00 : f32
    %1 = vector.broadcast %cst : f32 to vector<2x1x128xf32>
    %c0_2 = arith.constant 0 : index
    %c0_3 = arith.constant 0 : index
    %c0_4 = arith.constant 0 : index
    %2 = vector.load %arg18[%c0_2, %c0_3, %c0_4] : memref<2x20x128xf32, #tpu.memory_space<vmem>>, vector<2x1x128xf32>
    tpu.vector_store %arg18[%c0_2, %c0_3, %c0_4], %1 {strides = array<i32>} : memref<2x20x128xf32, #tpu.memory_space<vmem>>, vector<2x1x128xf32>,
    %cst_5 = arith.constant 0.000000e+00 : f32
    %3 = vector.broadcast %cst_5 : f32 to vector<2x1x128xf32>
    %c0_6 = arith.constant 0 : index
    %c17 = arith.constant 17 : index
    %c0_7 = arith.constant 0 : index
    %4 = vector.load %arg18[%c0_6, %c17, %c0_7] : memref<2x20x128xf32, #tpu.memory_space<vmem>>, vector<2x1x128xf32>
    tpu.vector_store %arg18[%c0_6, %c17, %c0_7], %3 {strides = array<i32>} : memref<2x20x128xf32, #tpu.memory_space<vmem>>, vector<2x1x128xf32>,
    %c0_8 = arith.constant 0 : index
    %c1 = arith.constant 1 : index
    %c0_9 = arith.constant 0 : index
    %5 = vector.load %arg18[%c0_8, %c1, %c0_9] : memref<2x20x128xf32, #tpu.memory_space<vmem>>, vector<2x16x128xf32>
    tpu.vector_store %arg18[%c0_8, %c1, %c0_9], %0 {strides = array<i32>} : memref<2x20x128xf32, #tpu.memory_space<vmem>>, vector<2x16x128xf32>,
    %c0_10 = arith.constant 0 : index
    %c0_11 = arith.constant 0 : index
    %c0_12 = arith.constant 0 : index
    %6 = vector.load %arg18[%c0_10, %c0_11, %c0_12] : memref<2x20x128xf32, #tpu.memory_space<vmem>>, vector<2x16x128xf32>
    %c0_13 = arith.constant 0 : index
    %c1_14 = arith.constant 1 : index
    %c0_15 = arith.constant 0 : index
    %7 = vector.load %arg18[%c0_13, %c1_14, %c0_15] : memref<2x20x128xf32, #tpu.memory_space<vmem>>, vector<2x16x128xf32>
    %c0_16 = arith.constant 0 : index
    %c2 = arith.constant 2 : index
    %c0_17 = arith.constant 0 : index
    %8 = vector.load %arg18[%c0_16, %c2, %c0_17] : memref<2x20x128xf32, #tpu.memory_space<vmem>>, vector<2x16x128xf32>
    %9 = tpu.concatenate %6, %7, %8 in 2 : vector<2x16x128xf32>, vector<2x16x128xf32>, vector<2x16x128xf32> -> vector<2x16x384xf32>
    %10 = vector.shape_cast %9 : vector<2x16x384xf32> to vector<32x384xf32>
    %11 = arith.truncf %10 : vector<32x384xf32> to vector<32x384xbf16>
    %c0_18 = arith.constant 0 : index
    %c0_19 = arith.constant 0 : index
    %12 = vector.load %arg1[%c0_18, %c0_19] : memref<384x128xbf16, #tpu.memory_space<vmem>>, vector<384x128xbf16>
    %cst_20 = arith.constant dense<0.000000e+00> : vector<32x128xf32>
    %13 = tpu.matmul %11, %12, %cst_20 {dimension_numbers = #tpu.dot_dimension_numbers<[1], [0], [0], [1], [0, 0, 1, 1], [], []>} : vector<32x384xbf16>, vector<384x128xbf16>, vector<32x128xf32> -> vector<32x128xf32>
    %c0_21 = arith.constant 0 : index
    %c0_22 = arith.constant 0 : index
    %14 = vector.load %arg2[%c0_21, %c0_22] : memref<1x128xf32, #tpu.memory_space<vmem>>, vector<1x128xf32>
    %15 = vector.broadcast %14 : vector<1x128xf32> to vector<32x128xf32>
    %16 = arith.addf %13, %15 : vector<32x128xf32>
    %cst_23 = arith.constant 0.000000e+00 : f32
    %17 = vector.broadcast %cst_23 : f32 to vector<32x128xf32>
    %18 = arith.maximumf %16, %17 : vector<32x128xf32>
    %19 = vector.shape_cast %18 : vector<32x128xf32> to vector<2x16x128xf32>
    %cst_24 = arith.constant 0.000000e+00 : f32
    %20 = vector.broadcast %cst_24 : f32 to vector<2x1x128xf32>
    %c0_25 = arith.constant 0 : index
    %c0_26 = arith.constant 0 : index
    %c0_27 = arith.constant 0 : index
    %21 = vector.load %arg18[%c0_25, %c0_26, %c0_27] : memref<2x20x128xf32, #tpu.memory_space<vmem>>, vector<2x1x128xf32>
    tpu.vector_store %arg18[%c0_25, %c0_26, %c0_27], %20 {strides = array<i32>} : memref<2x20x128xf32, #tpu.memory_space<vmem>>, vector<2x1x128xf32>,
    %cst_28 = arith.constant 0.000000e+00 : f32
    %22 = vector.broadcast %cst_28 : f32 to vector<2x1x128xf32>
    %c0_29 = arith.constant 0 : index
    %c17_30 = arith.constant 17 : index
    %c0_31 = arith.constant 0 : index
    %23 = vector.load %arg18[%c0_29, %c17_30, %c0_31] : memref<2x20x128xf32, #tpu.memory_space<vmem>>, vector<2x1x128xf32>
    tpu.vector_store %arg18[%c0_29, %c17_30, %c0_31], %22 {strides = array<i32>} : memref<2x20x128xf32, #tpu.memory_space<vmem>>, vector<2x1x128xf32>,
    %c0_32 = arith.constant 0 : index
    %c1_33 = arith.constant 1 : index
    %c0_34 = arith.constant 0 : index
    %24 = vector.load %arg18[%c0_32, %c1_33, %c0_34] : memref<2x20x128xf32, #tpu.memory_space<vmem>>, vector<2x16x128xf32>
    tpu.vector_store %arg18[%c0_32, %c1_33, %c0_34], %19 {strides = array<i32>} : memref<2x20x128xf32, #tpu.memory_space<vmem>>, vector<2x16x128xf32>,
    %c0_35 = arith.constant 0 : index
    %c0_36 = arith.constant 0 : index
    %c0_37 = arith.constant 0 : index
    %25 = vector.load %arg18[%c0_35, %c0_36, %c0_37] : memref<2x20x128xf32, #tpu.memory_space<vmem>>, vector<2x16x128xf32>
    %c0_38 = arith.constant 0 : index
    %c1_39 = arith.constant 1 : index
    %c0_40 = arith.constant 0 : index
    %26 = vector.load %arg18[%c0_38, %c1_39, %c0_40] : memref<2x20x128xf32, #tpu.memory_space<vmem>>, vector<2x16x128xf32>
    %c0_41 = arith.constant 0 : index
    %c2_42 = arith.constant 2 : index
    %c0_43 = arith.constant 0 : index
    %27 = vector.load %arg18[%c0_41, %c2_42, %c0_43] : memref<2x20x128xf32, #tpu.memory_space<vmem>>, vector<2x16x128xf32>
    %28 = tpu.concatenate %25, %26, %27 in 2 : vector<2x16x128xf32>, vector<2x16x128xf32>, vector<2x16x128xf32> -> vector<2x16x384xf32>
    %29 = vector.shape_cast %28 : vector<2x16x384xf32> to vector<32x384xf32>
    %30 = arith.truncf %29 : vector<32x384xf32> to vector<32x384xbf16>
    %c0_44 = arith.constant 0 : index
    %c0_45 = arith.constant 0 : index
    %31 = vector.load %arg3[%c0_44, %c0_45] : memref<384x128xbf16, #tpu.memory_space<vmem>>, vector<384x128xbf16>
    %cst_46 = arith.constant dense<0.000000e+00> : vector<32x128xf32>
    %32 = tpu.matmul %30, %31, %cst_46 {dimension_numbers = #tpu.dot_dimension_numbers<[1], [0], [0], [1], [0, 0, 1, 1], [], []>} : vector<32x384xbf16>, vector<384x128xbf16>, vector<32x128xf32> -> vector<32x128xf32>
    %c0_47 = arith.constant 0 : index
    %c0_48 = arith.constant 0 : index
    %33 = vector.load %arg4[%c0_47, %c0_48] : memref<1x128xf32, #tpu.memory_space<vmem>>, vector<1x128xf32>
    %34 = vector.broadcast %33 : vector<1x128xf32> to vector<32x128xf32>
    %35 = arith.addf %32, %34 : vector<32x128xf32>
    %cst_49 = arith.constant 0.000000e+00 : f32
    %36 = vector.broadcast %cst_49 : f32 to vector<32x128xf32>
    %37 = arith.maximumf %35, %36 : vector<32x128xf32>
    %38 = vector.shape_cast %37 : vector<32x128xf32> to vector<2x16x128xf32>
    %cst_50 = arith.constant 0.000000e+00 : f32
    %39 = vector.broadcast %cst_50 : f32 to vector<2x1x128xf32>
    %c0_51 = arith.constant 0 : index
    %c0_52 = arith.constant 0 : index
    %c0_53 = arith.constant 0 : index
    %40 = vector.load %arg18[%c0_51, %c0_52, %c0_53] : memref<2x20x128xf32, #tpu.memory_space<vmem>>, vector<2x1x128xf32>
    tpu.vector_store %arg18[%c0_51, %c0_52, %c0_53], %39 {strides = array<i32>} : memref<2x20x128xf32, #tpu.memory_space<vmem>>, vector<2x1x128xf32>,
    %cst_54 = arith.constant 0.000000e+00 : f32
    %41 = vector.broadcast %cst_54 : f32 to vector<2x1x128xf32>
    %c0_55 = arith.constant 0 : index
    %c17_56 = arith.constant 17 : index
    %c0_57 = arith.constant 0 : index
    %42 = vector.load %arg18[%c0_55, %c17_56, %c0_57] : memref<2x20x128xf32, #tpu.memory_space<vmem>>, vector<2x1x128xf32>
    tpu.vector_store %arg18[%c0_55, %c17_56, %c0_57], %41 {strides = array<i32>} : memref<2x20x128xf32, #tpu.memory_space<vmem>>, vector<2x1x128xf32>,
    %c0_58 = arith.constant 0 : index
    %c1_59 = arith.constant 1 : index
    %c0_60 = arith.constant 0 : index
    %43 = vector.load %arg18[%c0_58, %c1_59, %c0_60] : memref<2x20x128xf32, #tpu.memory_space<vmem>>, vector<2x16x128xf32>
    tpu.vector_store %arg18[%c0_58, %c1_59, %c0_60], %38 {strides = array<i32>} : memref<2x20x128xf32, #tpu.memory_space<vmem>>, vector<2x16x128xf32>,
    %c0_61 = arith.constant 0 : index
    %c0_62 = arith.constant 0 : index
    %c0_63 = arith.constant 0 : index
    %44 = vector.load %arg18[%c0_61, %c0_62, %c0_63] : memref<2x20x128xf32, #tpu.memory_space<vmem>>, vector<2x16x128xf32>
    %c0_64 = arith.constant 0 : index
    %c1_65 = arith.constant 1 : index
    %c0_66 = arith.constant 0 : index
    %45 = vector.load %arg18[%c0_64, %c1_65, %c0_66] : memref<2x20x128xf32, #tpu.memory_space<vmem>>, vector<2x16x128xf32>
    %c0_67 = arith.constant 0 : index
    %c2_68 = arith.constant 2 : index
    %c0_69 = arith.constant 0 : index
    %46 = vector.load %arg18[%c0_67, %c2_68, %c0_69] : memref<2x20x128xf32, #tpu.memory_space<vmem>>, vector<2x16x128xf32>
    %47 = tpu.concatenate %44, %45, %46 in 2 : vector<2x16x128xf32>, vector<2x16x128xf32>, vector<2x16x128xf32> -> vector<2x16x384xf32>
    %48 = vector.shape_cast %47 : vector<2x16x384xf32> to vector<32x384xf32>
    %49 = arith.truncf %48 : vector<32x384xf32> to vector<32x384xbf16>
    %c0_70 = arith.constant 0 : index
    %c0_71 = arith.constant 0 : index
    %50 = vector.load %arg5[%c0_70, %c0_71] : memref<384x128xbf16, #tpu.memory_space<vmem>>, vector<384x128xbf16>
    %cst_72 = arith.constant dense<0.000000e+00> : vector<32x128xf32>
    %51 = tpu.matmul %49, %50, %cst_72 {dimension_numbers = #tpu.dot_dimension_numbers<[1], [0], [0], [1], [0, 0, 1, 1], [], []>} : vector<32x384xbf16>, vector<384x128xbf16>, vector<32x128xf32> -> vector<32x128xf32>
    %c0_73 = arith.constant 0 : index
    %c0_74 = arith.constant 0 : index
    %52 = vector.load %arg6[%c0_73, %c0_74] : memref<1x128xf32, #tpu.memory_space<vmem>>, vector<1x128xf32>
    %53 = vector.broadcast %52 : vector<1x128xf32> to vector<32x128xf32>
    %54 = arith.addf %51, %53 : vector<32x128xf32>
    %cst_75 = arith.constant 0.000000e+00 : f32
    %55 = vector.broadcast %cst_75 : f32 to vector<32x128xf32>
    %56 = arith.maximumf %54, %55 : vector<32x128xf32>
    %57 = vector.shape_cast %56 : vector<32x128xf32> to vector<2x16x128xf32>
    %cst_76 = arith.constant 0.000000e+00 : f32
    %58 = vector.broadcast %cst_76 : f32 to vector<2x2x128xf32>
    %c0_77 = arith.constant 0 : index
    %c0_78 = arith.constant 0 : index
    %c0_79 = arith.constant 0 : index
    %59 = vector.load %arg18[%c0_77, %c0_78, %c0_79] : memref<2x20x128xf32, #tpu.memory_space<vmem>>, vector<2x2x128xf32>
    tpu.vector_store %arg18[%c0_77, %c0_78, %c0_79], %58 {strides = array<i32>} : memref<2x20x128xf32, #tpu.memory_space<vmem>>, vector<2x2x128xf32>,
    %cst_80 = arith.constant 0.000000e+00 : f32
    %60 = vector.broadcast %cst_80 : f32 to vector<2x2x128xf32>
    %c0_81 = arith.constant 0 : index
    %c18 = arith.constant 18 : index
    %c0_82 = arith.constant 0 : index
    %61 = vector.load %arg18[%c0_81, %c18, %c0_82] : memref<2x20x128xf32, #tpu.memory_space<vmem>>, vector<2x2x128xf32>
    tpu.vector_store %arg18[%c0_81, %c18, %c0_82], %60 {strides = array<i32>} : memref<2x20x128xf32, #tpu.memory_space<vmem>>, vector<2x2x128xf32>,
    %c0_83 = arith.constant 0 : index
    %c2_84 = arith.constant 2 : index
    %c0_85 = arith.constant 0 : index
    %62 = vector.load %arg18[%c0_83, %c2_84, %c0_85] : memref<2x20x128xf32, #tpu.memory_space<vmem>>, vector<2x16x128xf32>
    tpu.vector_store %arg18[%c0_83, %c2_84, %c0_85], %57 {strides = array<i32>} : memref<2x20x128xf32, #tpu.memory_space<vmem>>, vector<2x16x128xf32>,
    %c0_86 = arith.constant 0 : index
    %c0_87 = arith.constant 0 : index
    %c0_88 = arith.constant 0 : index
    %63 = vector.load %arg18[%c0_86, %c0_87, %c0_88] : memref<2x20x128xf32, #tpu.memory_space<vmem>>, vector<2x16x128xf32>
    %c0_89 = arith.constant 0 : index
    %c2_90 = arith.constant 2 : index
    %c0_91 = arith.constant 0 : index
    %64 = vector.load %arg18[%c0_89, %c2_90, %c0_91] : memref<2x20x128xf32, #tpu.memory_space<vmem>>, vector<2x16x128xf32>
    %c0_92 = arith.constant 0 : index
    %c4 = arith.constant 4 : index
    %c0_93 = arith.constant 0 : index
    %65 = vector.load %arg18[%c0_92, %c4, %c0_93] : memref<2x20x128xf32, #tpu.memory_space<vmem>>, vector<2x16x128xf32>
    %66 = tpu.concatenate %63, %64, %65 in 2 : vector<2x16x128xf32>, vector<2x16x128xf32>, vector<2x16x128xf32> -> vector<2x16x384xf32>
    %67 = vector.shape_cast %66 : vector<2x16x384xf32> to vector<32x384xf32>
    %68 = arith.truncf %67 : vector<32x384xf32> to vector<32x384xbf16>
    %c0_94 = arith.constant 0 : index
    %c0_95 = arith.constant 0 : index
    %69 = vector.load %arg7[%c0_94, %c0_95] : memref<384x128xbf16, #tpu.memory_space<vmem>>, vector<384x128xbf16>
    %cst_96 = arith.constant dense<0.000000e+00> : vector<32x128xf32>
    %70 = tpu.matmul %68, %69, %cst_96 {dimension_numbers = #tpu.dot_dimension_numbers<[1], [0], [0], [1], [0, 0, 1, 1], [], []>} : vector<32x384xbf16>, vector<384x128xbf16>, vector<32x128xf32> -> vector<32x128xf32>
    %c0_97 = arith.constant 0 : index
    %c0_98 = arith.constant 0 : index
    %71 = vector.load %arg8[%c0_97, %c0_98] : memref<1x128xf32, #tpu.memory_space<vmem>>, vector<1x128xf32>
    %72 = vector.broadcast %71 : vector<1x128xf32> to vector<32x128xf32>
    %73 = arith.addf %70, %72 : vector<32x128xf32>
    %cst_99 = arith.constant 0.000000e+00 : f32
    %74 = vector.broadcast %cst_99 : f32 to vector<32x128xf32>
    %75 = arith.maximumf %73, %74 : vector<32x128xf32>
    %76 = vector.shape_cast %75 : vector<32x128xf32> to vector<2x16x128xf32>
    %cst_100 = arith.constant 0.000000e+00 : f32
    %77 = vector.broadcast %cst_100 : f32 to vector<2x1x128xf32>
    %c0_101 = arith.constant 0 : index
    %c0_102 = arith.constant 0 : index
    %c0_103 = arith.constant 0 : index
    %78 = vector.load %arg18[%c0_101, %c0_102, %c0_103] : memref<2x20x128xf32, #tpu.memory_space<vmem>>, vector<2x1x128xf32>
    tpu.vector_store %arg18[%c0_101, %c0_102, %c0_103], %77 {strides = array<i32>} : memref<2x20x128xf32, #tpu.memory_space<vmem>>, vector<2x1x128xf32>,
    %cst_104 = arith.constant 0.000000e+00 : f32
    %79 = vector.broadcast %cst_104 : f32 to vector<2x1x128xf32>
    %c0_105 = arith.constant 0 : index
    %c17_106 = arith.constant 17 : index
    %c0_107 = arith.constant 0 : index
    %80 = vector.load %arg18[%c0_105, %c17_106, %c0_107] : memref<2x20x128xf32, #tpu.memory_space<vmem>>, vector<2x1x128xf32>
    tpu.vector_store %arg18[%c0_105, %c17_106, %c0_107], %79 {strides = array<i32>} : memref<2x20x128xf32, #tpu.memory_space<vmem>>, vector<2x1x128xf32>,
    %c0_108 = arith.constant 0 : index
    %c1_109 = arith.constant 1 : index
    %c0_110 = arith.constant 0 : index
    %81 = vector.load %arg18[%c0_108, %c1_109, %c0_110] : memref<2x20x128xf32, #tpu.memory_space<vmem>>, vector<2x16x128xf32>
    tpu.vector_store %arg18[%c0_108, %c1_109, %c0_110], %76 {strides = array<i32>} : memref<2x20x128xf32, #tpu.memory_space<vmem>>, vector<2x16x128xf32>,
    %c0_111 = arith.constant 0 : index
    %c0_112 = arith.constant 0 : index
    %c0_113 = arith.constant 0 : index
    %82 = vector.load %arg18[%c0_111, %c0_112, %c0_113] : memref<2x20x128xf32, #tpu.memory_space<vmem>>, vector<2x16x128xf32>
    %c0_114 = arith.constant 0 : index
    %c1_115 = arith.constant 1 : index
    %c0_116 = arith.constant 0 : index
    %83 = vector.load %arg18[%c0_114, %c1_115, %c0_116] : memref<2x20x128xf32, #tpu.memory_space<vmem>>, vector<2x16x128xf32>
    %c0_117 = arith.constant 0 : index
    %c2_118 = arith.constant 2 : index
    %c0_119 = arith.constant 0 : index
    %84 = vector.load %arg18[%c0_117, %c2_118, %c0_119] : memref<2x20x128xf32, #tpu.memory_space<vmem>>, vector<2x16x128xf32>
    %85 = tpu.concatenate %82, %83, %84 in 2 : vector<2x16x128xf32>, vector<2x16x128xf32>, vector<2x16x128xf32> -> vector<2x16x384xf32>
    %86 = vector.shape_cast %85 : vector<2x16x384xf32> to vector<32x384xf32>
    %87 = arith.truncf %86 : vector<32x384xf32> to vector<32x384xbf16>
    %c0_120 = arith.constant 0 : index
    %c0_121 = arith.constant 0 : index
    %88 = vector.load %arg9[%c0_120, %c0_121] : memref<384x128xbf16, #tpu.memory_space<vmem>>, vector<384x128xbf16>
    %cst_122 = arith.constant dense<0.000000e+00> : vector<32x128xf32>
    %89 = tpu.matmul %87, %88, %cst_122 {dimension_numbers = #tpu.dot_dimension_numbers<[1], [0], [0], [1], [0, 0, 1, 1], [], []>} : vector<32x384xbf16>, vector<384x128xbf16>, vector<32x128xf32> -> vector<32x128xf32>
    %c0_123 = arith.constant 0 : index
    %c0_124 = arith.constant 0 : index
    %90 = vector.load %arg10[%c0_123, %c0_124] : memref<1x128xf32, #tpu.memory_space<vmem>>, vector<1x128xf32>
    %91 = vector.broadcast %90 : vector<1x128xf32> to vector<32x128xf32>
    %92 = arith.addf %89, %91 : vector<32x128xf32>
    %cst_125 = arith.constant 0.000000e+00 : f32
    %93 = vector.broadcast %cst_125 : f32 to vector<32x128xf32>
    %94 = arith.maximumf %92, %93 : vector<32x128xf32>
    %95 = vector.shape_cast %94 : vector<32x128xf32> to vector<2x16x128xf32>
    %96 = vector.extract_strided_slice %95 {offsets = [0, 0, 0], sizes = [2, 1, 128], strides = [1, 1, 1]} : vector<2x16x128xf32> to vector<2x1x128xf32>
    %97 = vector.shape_cast %96 : vector<2x1x128xf32> to vector<2x128xf32>
    %98 = vector.extract_strided_slice %95 {offsets = [0, 2, 0], sizes = [2, 1, 128], strides = [1, 1, 1]} : vector<2x16x128xf32> to vector<2x1x128xf32>
    %99 = vector.shape_cast %98 : vector<2x1x128xf32> to vector<2x128xf32>
    %100 = vector.extract_strided_slice %95 {offsets = [0, 4, 0], sizes = [2, 1, 128], strides = [1, 1, 1]} : vector<2x16x128xf32> to vector<2x1x128xf32>
    %101 = vector.shape_cast %100 : vector<2x1x128xf32> to vector<2x128xf32>
    %102 = vector.extract_strided_slice %95 {offsets = [0, 6, 0], sizes = [2, 1, 128], strides = [1, 1, 1]} : vector<2x16x128xf32> to vector<2x1x128xf32>
    %103 = vector.shape_cast %102 : vector<2x1x128xf32> to vector<2x128xf32>
    %104 = vector.extract_strided_slice %95 {offsets = [0, 8, 0], sizes = [2, 1, 128], strides = [1, 1, 1]} : vector<2x16x128xf32> to vector<2x1x128xf32>
    %105 = vector.shape_cast %104 : vector<2x1x128xf32> to vector<2x128xf32>
    %106 = vector.extract_strided_slice %95 {offsets = [0, 10, 0], sizes = [2, 1, 128], strides = [1, 1, 1]} : vector<2x16x128xf32> to vector<2x1x128xf32>
    %107 = vector.shape_cast %106 : vector<2x1x128xf32> to vector<2x128xf32>
    %108 = vector.extract_strided_slice %95 {offsets = [0, 12, 0], sizes = [2, 1, 128], strides = [1, 1, 1]} : vector<2x16x128xf32> to vector<2x1x128xf32>
    %109 = vector.shape_cast %108 : vector<2x1x128xf32> to vector<2x128xf32>
    %110 = vector.extract_strided_slice %95 {offsets = [0, 14, 0], sizes = [2, 1, 128], strides = [1, 1, 1]} : vector<2x16x128xf32> to vector<2x1x128xf32>
    %111 = vector.shape_cast %110 : vector<2x1x128xf32> to vector<2x128xf32>
    %112 = tpu.concatenate %97, %99, %101, %103, %105, %107, %109, %111 in 1 : vector<2x128xf32>, vector<2x128xf32>, vector<2x128xf32>, vector<2x128xf32>, vector<2x128xf32>, vector<2x128xf32>, vector<2x128xf32>, vector<2x128xf32> -> vector<2x1024xf32>
    %113 = arith.truncf %112 : vector<2x1024xf32> to vector<2x1024xbf16>
    %c0_126 = arith.constant 0 : index
    %c0_127 = arith.constant 0 : index
    %114 = vector.load %arg11[%c0_126, %c0_127] : memref<1024x32xbf16, #tpu.memory_space<vmem>>, vector<1024x32xbf16>
    %cst_128 = arith.constant dense<0.000000e+00> : vector<2x32xf32>
    %115 = tpu.matmul %113, %114, %cst_128 {dimension_numbers = #tpu.dot_dimension_numbers<[1], [0], [0], [1], [0, 0, 1, 1], [], []>} : vector<2x1024xbf16>, vector<1024x32xbf16>, vector<2x32xf32> -> vector<2x32xf32>
    %c0_129 = arith.constant 0 : index
    %c0_130 = arith.constant 0 : index
    %116 = vector.load %arg12[%c0_129, %c0_130] : memref<1x32xf32, #tpu.memory_space<vmem>>, vector<1x32xf32>
    %117 = vector.broadcast %116 : vector<1x32xf32> to vector<2x32xf32>
    %118 = arith.addf %115, %117 : vector<2x32xf32>
    %cst_131 = arith.constant 0.000000e+00 : f32
    %119 = vector.broadcast %cst_131 : f32 to vector<2x32xf32>
    %120 = arith.maximumf %118, %119 : vector<2x32xf32>
    %121 = arith.truncf %120 : vector<2x32xf32> to vector<2x32xbf16>
    %c0_132 = arith.constant 0 : index
    %c0_133 = arith.constant 0 : index
    %122 = vector.load %arg13[%c0_132, %c0_133] : memref<32x16xbf16, #tpu.memory_space<vmem>>, vector<32x16xbf16>
    %cst_134 = arith.constant dense<0.000000e+00> : vector<2x16xf32>
    %123 = tpu.matmul %121, %122, %cst_134 {dimension_numbers = #tpu.dot_dimension_numbers<[1], [0], [0], [1], [0, 0, 1, 1], [], []>} : vector<2x32xbf16>, vector<32x16xbf16>, vector<2x16xf32> -> vector<2x16xf32>
    %c0_135 = arith.constant 0 : index
    %c0_136 = arith.constant 0 : index
    %124 = vector.load %arg14[%c0_135, %c0_136] : memref<1x16xf32, #tpu.memory_space<vmem>>, vector<1x16xf32>
    %125 = vector.broadcast %124 : vector<1x16xf32> to vector<2x16xf32>
    %126 = arith.addf %123, %125 : vector<2x16xf32>
    %cst_137 = arith.constant 0.000000e+00 : f32
    %127 = vector.broadcast %cst_137 : f32 to vector<2x16xf32>
    %128 = arith.maximumf %126, %127 : vector<2x16xf32>
    %129 = arith.truncf %128 : vector<2x16xf32> to vector<2x16xbf16>
    %c0_138 = arith.constant 0 : index
    %c0_139 = arith.constant 0 : index
    %130 = vector.load %arg15[%c0_138, %c0_139] : memref<16x3xbf16, #tpu.memory_space<vmem>>, vector<16x3xbf16>
    %cst_140 = arith.constant dense<0.000000e+00> : vector<2x3xf32>
    %131 = tpu.matmul %129, %130, %cst_140 {dimension_numbers = #tpu.dot_dimension_numbers<[1], [0], [0], [1], [0, 0, 1, 1], [], []>} : vector<2x16xbf16>, vector<16x3xbf16>, vector<2x3xf32> -> vector<2x3xf32>
    %c0_141 = arith.constant 0 : index
    %c0_142 = arith.constant 0 : index
    %132 = vector.load %arg16[%c0_141, %c0_142] : memref<1x3xf32, #tpu.memory_space<vmem>>, vector<1x3xf32>
    %133 = vector.broadcast %132 : vector<1x3xf32> to vector<2x3xf32>
    %134 = arith.addf %131, %133 : vector<2x3xf32>
    %c0_143 = arith.constant 0 : index
    %c0_144 = arith.constant 0 : index
    %135 = vector.load %arg17[%c0_143, %c0_144] : memref<2x3xf32, #tpu.memory_space<vmem>>, vector<2x3xf32>
    tpu.vector_store %arg17[%c0_143, %c0_144], %134 {strides = array<i32>} : memref<2x3xf32, #tpu.memory_space<vmem>>, vector<2x3xf32>,
    return
  }
}

</mosaic_0001>

<bundles_post_ra>
// kernel: tpu_custom_call.1
= control target key start
LH: loop header
LB: loop body
LE: loop exit
PB: predicated region body
PF: predicated region fallthrough
CT: control target
= control target key end

     0   :  { %s3885_s0 = inlined_call_operand.vmem [shape: f32[2,16,128], index: 0, kind: input, shape index: {}]   ;;  %s3886_s1 = inlined_call_operand.vmem [shape: bf16[384,128], index: 1, kind: input, shape index: {}]   ;;  %s3887_s2 = inlined_call_operand.vmem [shape: f32[1,128], index: 2, kind: input, shape index: {}]   ;;  %s3888_s3 = inlined_call_operand.vmem [shape: bf16[384,128], index: 3, kind: input, shape index: {}]   ;;  %s3889_s4 = inlined_call_operand.vmem [shape: f32[1,128], index: 4, kind: input, shape index: {}]   ;;  %s3890_s5 = inlined_call_operand.vmem [shape: bf16[384,128], index: 5, kind: input, shape index: {}]   ;;  %s3891_s6 = inlined_call_operand.vmem [shape: f32[1,128], index: 6, kind: input, shape index: {}]   ;;  %s3892_s7 = inlined_call_operand.hbm [shape: bf16[384,128], index: 7, kind: input, shape index: {}]   ;;  %s3893_s8 = inlined_call_operand.vmem [shape: f32[1,128], index: 8, kind: input, shape index: {}]   ;;  %s3894_s9 = inlined_call_operand.hbm [shape: bf16[384,128], index: 9, kind: input, shape index: {}]   ;;  %s3895_s10 = inlined_call_operand.vmem [shape: f32[1,128], index: 10, kind: input, shape index: {}]   ;;  %s3896_s11 = inlined_call_operand.vmem [shape: bf16[1024,32], index: 11, kind: input, shape index: {}]   ;;  %s3897_s12 = inlined_call_operand.vmem [shape: f32[1,32], index: 12, kind: input, shape index: {}]   ;;  %s3898_s13 = inlined_call_operand.vmem [shape: bf16[32,16], index: 13, kind: input, shape index: {}]   ;;  %s3899_s14 = inlined_call_operand.vmem [shape: f32[1,16], index: 14, kind: input, shape index: {}]   ;;  %s3900_s15 = inlined_call_operand.vmem [shape: bf16[16,3], index: 15, kind: input, shape index: {}]   ;;  %s3901_s16 = inlined_call_operand.vmem [shape: f32[1,3], index: 16, kind: input, shape index: {}]   ;;  %s3902_s17 = inlined_call_operand.hbm [shape: f32[2,3], index: 17, kind: output, shape index: {}]  }
   0x1   :  { %3905 = sst [smem:[#allocation12_spill]] %s3885_s0 }
   0x2   :  { %3906 = sst [smem:[#allocation13_spill]] %s3886_s1 }
   0x3   :  { %22 = vsyncpa [#allocation4], 0 }
   0x4   :  { %23 = vsyncpa [#allocation7], 0 }
   0x5   :  { %24 = vsyncpa [#allocation5], 0  ;;  %s43_s26 = sshll.u32 %s3892_s7, 4  ;;  %s3291_s27 = smov [#allocation3]   ;;  %s44_s26 = int_to_ptr.hbm [resolvable:$true] %s43_s26 }
   0x6   :  { %s45_s28 = sshll.u32 %s3291_s27, 4  ;;  %s58_s30 = sshll.u32 %s3894_s9, 4  ;;  %s46_s28 = int_to_ptr.vmem [resolvable:$true] %s45_s28  ;;  %s59_s30 = int_to_ptr.hbm [resolvable:$true] %s58_s30 }
   0x7   :  { %s3292_s18 = smov 64   ;;  %s3293_s19 = smov 4  }
   0x8   :  { %51 = dma.hbm_to_vmem [thread:$0]  %s44_s26, 3072, %s46_s28, [#allocation4], %s3292_s18, %s3292_s18, %s3293_s19  }
   0x9   :  { %s3294_s1 = smov [#allocation6]  }
   0xa   :  { %s60_s20 = sshll.u32 %s3294_s1, 4  ;;  %s61_s20 = int_to_ptr.vmem [resolvable:$true] %s60_s20 }
   0xb   :  { %66 = dma.hbm_to_vmem [thread:$0]  %s59_s30, 3072, %s61_s20, [#allocation7], %s3292_s18, %s3292_s18, %s3293_s19  }
   0xc   :  { %3285 = dma.done.wait [#allocation4], 3072  }
   0xd   :  { %3286 = vsyncadd [#allocation4], 4294964224 }
   0xe   :  { %3287 = dma.done.wait [#allocation7], 3072  }
   0xf   :  { %3288 = vsyncadd [#allocation7], 4294964224  ;;  %v3295_v0 = vmov 0.0   ;;  %s3907_s21 = sld [smem:[#allocation13_spill]]  ;;  %v3043_v25 = vld [vmem:[%s3888_s3 + $0x38] sm:$0xff]  ;;  %v3050_v46 = vld [vmem:[%s3888_s3 + $0x70] sm:$0xff] }
  0x10   :  { %94 = vst [vmem:[#allocation2] sm:$0x1] %v3295_v0  ;;  %s3908_s26 = sld [smem:[#allocation12_spill]]  ;;  %599 = vmatpush.bf16.msra.mxu3 %v3043_v25  ;;  %v3051_v36 = vld [vmem:[%s3888_s3 + $0x78] sm:$0xff]  ;;  %v3049_v47 = vld [vmem:[%s3888_s3 + $0x68] sm:$0xff]  ;;  %v3042_v48 = vld [vmem:[%s3888_s3 + $0x30] sm:$0xff] }
  0x11   :  { %95 = vst [vmem:[#allocation2 + $0x18] sm:$0x1] %v3295_v0  ;;  %v3059_v37 = vld [vmem:[%s3888_s3 + $0xb8] sm:$0xff]  ;;  %v3058_v49 = vld [vmem:[%s3888_s3 + $0xb0] sm:$0xff]  ;;  %v3048_v50 = vld [vmem:[%s3888_s3 + $0x60] sm:$0xff]  ;;  %vm1512_vm0 = vcmask 1041409  }
  0x12   :  { %96 = vst [vmem:[#allocation2 + $0x11] sm:$0x1] %v3295_v0  ;;  %v3041_v51 = vld [vmem:[%s3888_s3 + $0x28] sm:$0xff]  ;;  %v3047_v53 = vld [vmem:[%s3888_s3 + $0x58] sm:$0xff]  ;;  %v3040_v54 = vld [vmem:[%s3888_s3 + $0x20] sm:$0xff]  ;;  %vm2194_vm1 = vcmask 261120  }
  0x13   :  { %97 = vst [vmem:[#allocation2 + $0x29] sm:$0x1] %v3295_v0  ;;  %v3057_v52 = vld [vmem:[%s3888_s3 + $0xa8] sm:$0xff]  ;;  %v3056_v55 = vld [vmem:[%s3888_s3 + $0xa0] sm:$0xff]  ;;  %v3046_v56 = vld [vmem:[%s3888_s3 + $0x50] sm:$0xff]  ;;  %vm2225_vm2 = vcmask 130048  }
  0x14   :  { %945 = vst [vmem:[#allocation2 + $0x12] sm:$0x3] %v3295_v0  ;;  %600 = vmatpush.bf16.msra.mxu3 %v3042_v48  ;;  %v3039_v57 = vld [vmem:[%s3888_s3 + $0x18] sm:$0xff]  ;;  %v3045_v59 = vld [vmem:[%s3888_s3 + $0x48] sm:$0xff]  ;;  %v3038_v60 = vld [vmem:[%s3888_s3 + $0x10] sm:$0xff]  ;;  %s3296_s9 = smov [#allocation8]  }
  0x15   :  { %946 = vst [vmem:[#allocation2 + $0x2a] sm:$0x3] %v3295_v0  ;;  %v3019_v1 = vld [vmem:[%s3907_s21 + $0x38] sm:$0xff]  ;;  %v3018_v4 = vld [vmem:[%s3907_s21 + $0x30] sm:$0xff]  ;;  %v3017_v7 = vld [vmem:[%s3907_s21 + $0x28] sm:$0xff]  ;;  %s2249_s22 = sshll.u32 %s3296_s9, 4  ;;  %s2250_s22 = int_to_ptr.vmem [resolvable:$true] %s2249_s22 }
  0x16   :  { %v3027_v2 = vld [vmem:[%s3907_s21 + $0x78] sm:$0xff]  ;;  %316 = vmatpush.bf16.msra.mxu0 %v3019_v1  ;;  %v3026_v5 = vld [vmem:[%s3907_s21 + $0x70] sm:$0xff]  ;;  %v3025_v8 = vld [vmem:[%s3907_s21 + $0x68] sm:$0xff]  ;;  %s2251_s25 = sshll.u32 %s3902_s17, 4  ;;  %vm2242_vm3 = vcmask 17408   ;;  %s2252_s25 = int_to_ptr.hbm [resolvable:$true] %s2251_s25 }
  0x17   :  { %v3035_v3 = vld [vmem:[%s3907_s21 + $0xb8] sm:$0xff]  ;;  %335 = vmatpush.bf16.msra.mxu1 %v3027_v2  ;;  %v3034_v6 = vld [vmem:[%s3907_s21 + $0xb0] sm:$0xff]  ;;  %v3033_v9 = vld [vmem:[%s3907_s21 + $0xa8] sm:$0xff] }
  0x18   :  { %354 = vmatpush.bf16.msra.mxu2 %v3035_v3  ;;  %v3016_v10 = vld [vmem:[%s3907_s21 + $0x20] sm:$0xff]  ;;  %v91_v12 = vld [vmem:[%s3908_s26 + $0x8] sm:$0xff]  ;;  %v3438_v13 = vld [vmem:[%s3908_s26 + $0x10] sm:$0xff]  ;;  %601 = vmatpush.bf16.msra.mxu3 %v3041_v51 }
  0x19   :  { %v90_v11 = vld [vmem:[%s3908_s26] sm:$0xff]  ;;  %v3443_v14 = vld [vmem:[%s3908_s26 + $0x18] sm:$0xff]  ;;  %99 = vst [vmem:[#allocation2 + $0x9] sm:$0xff] %v91_v12  ;;  %v3014_v21 = vld [vmem:[%s3907_s21 + $0x10] sm:$0xff] }
  0x1a   :  { %317 = vmatpush.bf16.msra.mxu0 %v3018_v4  ;;  %98 = vst [vmem:[#allocation2 + $0x1] sm:$0xff] %v90_v11  ;;  %v3024_v15 = vld [vmem:[%s3907_s21 + $0x60] sm:$0xff]  ;;  %v3015_v17 = vld [vmem:[%s3907_s21 + $0x18] sm:$0xff]  ;;  %v3022_v23 = vld [vmem:[%s3907_s21 + $0x50] sm:$0xff]  ;;  %v115_v39 = vpack.c.bf16 %v91_v12, %v90_v11  ;;  %v118_v44 = vpack.c.bf16 %v3443_v14, %v3438_v13 }
  0x1b   :  { %336 = vmatpush.bf16.msra.mxu1 %v3026_v5  ;;  %v3032_v16 = vld [vmem:[%s3907_s21 + $0xa0] sm:$0xff]  ;;  %100 = vst [vmem:[#allocation2 + $0x19] sm:$0xff] %v3438_v13  ;;  %v3023_v18 = vld [vmem:[%s3907_s21 + $0x58] sm:$0xff]  ;;  %v3030_v26 = vld [vmem:[%s3907_s21 + $0x90] sm:$0xff] }
  0x1c   :  { %355 = vmatpush.bf16.msra.mxu2 %v3034_v6  ;;  %101 = vst [vmem:[#allocation2 + $0x21] sm:$0xff] %v3443_v14  ;;  %v3031_v19 = vld [vmem:[%s3907_s21 + $0x98] sm:$0xff]  ;;  %v3013_v28 = vld [vmem:[%s3907_s21 + $0x8] sm:$0xff]  ;;  %v3012_v31 = vld [vmem:[%s3907_s21] sm:$0xff]  ;;  %602 = vmatpush.bf16.msra.mxu3 %v3040_v54 }
  0x1d   :  { %v3021_v29 = vld [vmem:[%s3907_s21 + $0x48] sm:$0xff]  ;;  %v3020_v32 = vld [vmem:[%s3907_s21 + $0x40] sm:$0xff]  ;;  %v3055_v58 = vld [vmem:[%s3888_s3 + $0x98] sm:$0xff] }
  0x1e   :  { %318 = vmatpush.bf16.msra.mxu0 %v3017_v7  ;;  %v3029_v30 = vld [vmem:[%s3907_s21 + $0x88] sm:$0xff]  ;;  %v3028_v34 = vld [vmem:[%s3907_s21 + $0x80] sm:$0xff]  ;;  %v3054_v61 = vld [vmem:[%s3888_s3 + $0x90] sm:$0xff] }
  0x1f   :  { %337 = vmatpush.bf16.msra.mxu1 %v3025_v8  ;;  %v3044_v62 = vld [vmem:[%s3888_s3 + $0x40] sm:$0xff]  ;;  %v3037_v63 = vld [vmem:[%s3888_s3 + $0x8] sm:$0xff]  ;;  %v3074_v48 = vld [vmem:[%s3890_s5 + $0x70] sm:$0xff] }
  0x20   :  { %356 = vmatpush.bf16.msra.mxu2 %v3033_v9  ;;  %v111_v22 = vld [vmem:[#allocation2 + $0xa] sm:$0xff]  ;;  %603 = vmatpush.bf16.msra.mxu3 %v3039_v57  ;;  %v3036_v2 = vld [vmem:[%s3888_s3] sm:$0xff]  ;;  %v3071_v57 = vld [vmem:[%s3890_s5 + $0x58] sm:$0xff] }
  0x21   :  { %v102_v20 = vld [vmem:[#allocation2] sm:$0xff]  ;;  %379 = vst [vmem:[#allocation2 + $0x11] sm:$0x1] %v3295_v0  ;;  %v103_v33 = vld [vmem:[#allocation2 + $0x8] sm:$0xff] }
  0x22   :  { %319 = vmatpush.bf16.msra.mxu0 %v3016_v10  ;;  %377 = vst [vmem:[#allocation2] sm:$0x1] %v3295_v0  ;;  %v104_v24 = vld [vmem:[#allocation2 + $0x18] sm:$0xff]  ;;  %v110_v35 = vld [vmem:[#allocation2 + $0x2] sm:$0xff]  ;;  %v114_v38 = vpack.c.bf16 %v103_v33, %v102_v20  ;;  %v3205_v4 = vld [vmem:[%s3887_s2] ss:$0 sm:$0xff] }
  0x23   :  { %338 = vmatpush.bf16.msra.mxu1 %v3024_v15  ;;  %378 = vst [vmem:[#allocation2 + $0x18] sm:$0x1] %v3295_v0  ;;  %v113_v27 = vld [vmem:[#allocation2 + $0x22] sm:$0xff]  ;;  %v116_v40 = vpack.c.bf16 %v111_v22, %v110_v35  ;;  %v112_v42 = vld [vmem:[#allocation2 + $0x1a] sm:$0xff] }
  0x24   :  { %357 = vmatpush.bf16.msra.mxu2 %v3032_v16  ;;  %380 = vst [vmem:[#allocation2 + $0x29] sm:$0x1] %v3295_v0  ;;  %v105_v41 = vld [vmem:[#allocation2 + $0x20] sm:$0xff]  ;;  %v119_v45 = vpack.c.bf16 %v113_v27, %v112_v42  ;;  %604 = vmatpush.bf16.msra.mxu3 %v3038_v60  ;;  %v3053_v1 = vld [vmem:[%s3888_s3 + $0x88] sm:$0xff]  ;;  %v3070_v60 = vld [vmem:[%s3890_s5 + $0x50] sm:$0xff] }
  0x25   :  { %v117_v43 = vpack.c.bf16 %v105_v41, %v104_v24  ;;  %v3052_v3 = vld [vmem:[%s3888_s3 + $0x80] sm:$0xff]  ;;  %v3073_v51 = vld [vmem:[%s3890_s5 + $0x68] sm:$0xff] }
  0x26   :  { %320 = vmatpush.bf16.msra.mxu0 %v3015_v17  ;;  %v3072_v54 = vld [vmem:[%s3890_s5 + $0x60] sm:$0xff] }
  0x27   :  { %339 = vmatpush.bf16.msra.mxu1 %v3023_v18 }
  0x28   :  { %358 = vmatpush.bf16.msra.mxu2 %v3031_v19  ;;  %605 = vmatpush.bf16.msra.mxu3 %v3037_v63  ;;  %v3069_v63 = vld [vmem:[%s3890_s5 + $0x48] sm:$0xff] }
  0x2a   :  { %321 = vmatpush.bf16.msra.mxu0 %v3014_v21 }
  0x2b   :  { %340 = vmatpush.bf16.msra.mxu1 %v3022_v23 }
  0x2c   :  { %359 = vmatpush.bf16.msra.mxu2 %v3030_v26  ;;  %606 = vmatpush.bf16.msra.mxu3 %v3036_v2  ;;  %v3078_v2 = vld [vmem:[%s3890_s5 + $0x90] sm:$0xff] }
  0x2e   :  { %322 = vmatpush.bf16.msra.mxu0 %v3013_v28 }
  0x2f   :  { %341 = vmatpush.bf16.msra.mxu1 %v3021_v29 }
  0x30   :  { %360 = vmatpush.bf16.msra.mxu2 %v3029_v30 }
  0x32   :  { %323 = vmatpush.bf16.msra.mxu0 %v3012_v31 }
  0x33   :  { %342 = vmatpush.bf16.msra.mxu1 %v3020_v32 }
  0x34   :  { %361 = vmatpush.bf16.msra.mxu2 %v3028_v34 }
  0x35   :  { %324 = vmatmul.bf16.vlgmr.msra.gmra.mxu0 %v114_v38 }
  0x36   :  { %618 = vmatpush.bf16.msrb.mxu0 %v3051_v36  ;;  %343 = vmatmul.bf16.vlgmr.msra.gmra.mxu1 %v115_v39 }
  0x37   :  { %637 = vmatpush.bf16.msrb.mxu1 %v3059_v37  ;;  %362 = vmatmul.bf16.vlgmr.msra.gmra.mxu2 %v116_v40 }
  0x3a   :  { %619 = vmatpush.bf16.msrb.mxu0 %v3050_v46 }
  0x3b   :  { %638 = vmatpush.bf16.msrb.mxu1 %v3058_v49  ;;  %v3067_v49 = vld [vmem:[%s3890_s5 + $0x38] sm:$0xff] }
  0x3c   :  { %882 = vmatpush.bf16.msrb.mxu2 %v3067_v49 }
  0x3e   :  { %620 = vmatpush.bf16.msrb.mxu0 %v3049_v47  ;;  %v3075_v47 = vld [vmem:[%s3890_s5 + $0x78] sm:$0xff] }
  0x3f   :  { %639 = vmatpush.bf16.msrb.mxu1 %v3057_v52  ;;  %901 = vmatpush.bf16.msrb.mxu3 %v3075_v47  ;;  %v3066_v52 = vld [vmem:[%s3890_s5 + $0x30] sm:$0xff] }
  0x40   :  { %883 = vmatpush.bf16.msrb.mxu2 %v3066_v52  ;;  %v3098_v52 = vld [vmem:[#allocation3 + $0x70] sm:$0xff] }
  0x42   :  { %621 = vmatpush.bf16.msrb.mxu0 %v3048_v50  ;;  %v3083_v50 = vld [vmem:[%s3890_s5 + $0xb8] sm:$0xff] }
  0x43   :  { %640 = vmatpush.bf16.msrb.mxu1 %v3056_v55  ;;  %902 = vmatpush.bf16.msrb.mxu3 %v3074_v48  ;;  %v3065_v55 = vld [vmem:[%s3890_s5 + $0x28] sm:$0xff] }
  0x44   :  { %884 = vmatpush.bf16.msrb.mxu2 %v3065_v55  ;;  %v3097_v55 = vld [vmem:[#allocation3 + $0x68] sm:$0xff] }
  0x45   :  { %329 = vmatmul.bf16.gmra.mxu0 %v117_v43 }
  0x46   :  { %348 = vmatmul.bf16.gmra.mxu1 %v118_v44  ;;  %622 = vmatpush.bf16.msrb.mxu0 %v3047_v53  ;;  %v3082_v53 = vld [vmem:[%s3890_s5 + $0xb0] sm:$0xff] }
  0x47   :  { %367 = vmatmul.bf16.gmra.mxu2 %v119_v45  ;;  %641 = vmatpush.bf16.msrb.mxu1 %v3055_v58  ;;  %v3064_v58 = vld [vmem:[%s3890_s5 + $0x20] sm:$0xff] }
  0x48   :  { %903 = vmatpush.bf16.msrb.mxu3 %v3073_v51  ;;  %885 = vmatpush.bf16.msrb.mxu2 %v3064_v58  ;;  %v3099_v51 = vld [vmem:[#allocation3 + $0x78] sm:$0xff]  ;;  %v3096_v58 = vld [vmem:[#allocation3 + $0x60] sm:$0xff] }
  0x4a   :  { %623 = vmatpush.bf16.msrb.mxu0 %v3046_v56  ;;  %v3081_v56 = vld [vmem:[%s3890_s5 + $0xa8] sm:$0xff] }
  0x4b   :  { %642 = vmatpush.bf16.msrb.mxu1 %v3054_v61  ;;  %v3063_v61 = vld [vmem:[%s3890_s5 + $0x18] sm:$0xff] }
  0x4c   :  { %904 = vmatpush.bf16.msrb.mxu3 %v3072_v54  ;;  %886 = vmatpush.bf16.msrb.mxu2 %v3063_v61  ;;  %v3107_v54 = vld [vmem:[#allocation3 + $0xb8] sm:$0xff] }
  0x4d   :  { %v3095_v61 = vld [vmem:[#allocation3 + $0x58] sm:$0xff] }
  0x4e   :  { %624 = vmatpush.bf16.msrb.mxu0 %v3045_v59  ;;  %v3080_v59 = vld [vmem:[%s3890_s5 + $0xa0] sm:$0xff] }
  0x4f   :  { %643 = vmatpush.bf16.msrb.mxu1 %v3053_v1  ;;  %v3062_v1 = vld [vmem:[%s3890_s5 + $0x10] sm:$0xff] }
  0x50   :  { %905 = vmatpush.bf16.msrb.mxu3 %v3071_v57  ;;  %887 = vmatpush.bf16.msrb.mxu2 %v3062_v1  ;;  %v3106_v57 = vld [vmem:[#allocation3 + $0xb0] sm:$0xff] }
  0x51   :  { %v3094_v1 = vld [vmem:[#allocation3 + $0x50] sm:$0xff] }
  0x52   :  { %625 = vmatpush.bf16.msrb.mxu0 %v3044_v62  ;;  %v3079_v62 = vld [vmem:[%s3890_s5 + $0x98] sm:$0xff] }
  0x53   :  { %644 = vmatpush.bf16.msrb.mxu1 %v3052_v3  ;;  %v3068_v3 = vld [vmem:[%s3890_s5 + $0x40] sm:$0xff] }
  0x54   :  { %906 = vmatpush.bf16.msrb.mxu3 %v3070_v60  ;;  %v3105_v60 = vld [vmem:[#allocation3 + $0xa8] sm:$0xff] }
  0x56   :  { %920 = vmatpush.bf16.msra.mxu0 %v3083_v50 }
  0x58   :  { %907 = vmatpush.bf16.msrb.mxu3 %v3069_v63  ;;  %v3104_v63 = vld [vmem:[#allocation3 + $0xa0] sm:$0xff] }
  0x5a   :  { %921 = vmatpush.bf16.msra.mxu0 %v3082_v53  ;;  %v3091_v53 = vld [vmem:[#allocation3 + $0x38] sm:$0xff] }
  0x5b   :  { %1165 = vmatpush.bf16.msra.mxu1 %v3091_v53 }
  0x5c   :  { %908 = vmatpush.bf16.msrb.mxu3 %v3068_v3  ;;  %v3103_v3 = vld [vmem:[#allocation3 + $0x98] sm:$0xff] }
  0x5e   :  { %922 = vmatpush.bf16.msra.mxu0 %v3081_v56  ;;  %v3090_v56 = vld [vmem:[#allocation3 + $0x30] sm:$0xff] }
  0x5f   :  { %1166 = vmatpush.bf16.msra.mxu1 %v3090_v56  ;;  %v3123_v56 = vld [vmem:[#allocation6 + $0x78] sm:$0xff] }
  0x62   :  { %923 = vmatpush.bf16.msra.mxu0 %v3080_v59  ;;  %v3089_v59 = vld [vmem:[#allocation3 + $0x28] sm:$0xff] }
  0x63   :  { %1167 = vmatpush.bf16.msra.mxu1 %v3089_v59  ;;  %v3121_v59 = vld [vmem:[#allocation6 + $0x68] sm:$0xff] }
  0x66   :  { %924 = vmatpush.bf16.msra.mxu0 %v3079_v62  ;;  %v3088_v62 = vld [vmem:[#allocation3 + $0x20] sm:$0xff] }
  0x67   :  { %1168 = vmatpush.bf16.msra.mxu1 %v3088_v62  ;;  %v3120_v62 = vld [vmem:[#allocation6 + $0x60] sm:$0xff] }
  0x6a   :  { %925 = vmatpush.bf16.msra.mxu0 %v3078_v2  ;;  %v3087_v2 = vld [vmem:[#allocation3 + $0x18] sm:$0xff] }
  0x6b   :  { %1169 = vmatpush.bf16.msra.mxu1 %v3087_v2  ;;  %v3119_v2 = vld [vmem:[#allocation6 + $0x58] sm:$0xff] }
  0xb2   :  { %v325_v5 = vpop.f32.mrf.mxu0 }
  0xb3   :  { %v344_v6 = vpop.f32.mrf.mxu1  ;;  %v326_v7 = vadd.f32 %v3205_v4, %v325_v5  ;;  %v3077_v5 = vld [vmem:[%s3890_s5 + $0x88] sm:$0xff] }
  0xb4   :  { %926 = vmatpush.bf16.msra.mxu0 %v3077_v5  ;;  %v3086_v5 = vld [vmem:[#allocation3 + $0x10] sm:$0xff] }
  0xb5   :  { %v345_v8 = vadd.f32 %v344_v6, %v326_v7  ;;  %v3060_v6 = vld [vmem:[%s3890_s5] sm:$0xff]  ;;  %1170 = vmatpush.bf16.msra.mxu1 %v3086_v5  ;;  %v3127_v5 = vld [vmem:[#allocation6 + $0x98] sm:$0xff] }
  0xb6   :  { %v3076_v7 = vld [vmem:[%s3890_s5 + $0x80] sm:$0xff] }
  0xb8   :  { %927 = vmatpush.bf16.msra.mxu0 %v3076_v7  ;;  %v3092_v7 = vld [vmem:[#allocation3 + $0x40] sm:$0xff] }
  0xba   :  { %v363_v9 = vpop.f32.mrf.mxu2  ;;  %v327_v11 = vpop.f32.mrf.mxu0 }
  0xbb   :  { %v364_v10 = vadd.f32 %v363_v9, %v345_v8  ;;  %v346_v12 = vpop.f32.mrf.mxu1  ;;  %v328_v14 = vadd.f32 %v3205_v4, %v327_v11  ;;  %v3206_v9 = vld [vmem:[%s3889_s4] ss:$0 sm:$0xff] }
  0xbd   :  { %v373_v13 = vmax.f32 %v364_v10, 0.0  ;;  %v347_v15 = vadd.f32 %v346_v12, %v328_v14 }
  0xbf   :  { %381 = vst [vmem:[#allocation2 + $0x1] sm:$0xff] %v373_v13 }
  0xc2   :  { %v365_v16 = vpop.f32.mrf.mxu2  ;;  %v330_v18 = vpop.f32.mrf.mxu0 }
  0xc3   :  { %v366_v17 = vadd.f32 %v365_v16, %v347_v15  ;;  %v331_v19 = vadd.f32 %v3205_v4, %v330_v18  ;;  %v349_v21 = vpop.f32.mrf.mxu1 }
  0xc5   :  { %v374_v20 = vmax.f32 %v366_v17, 0.0  ;;  %v350_v22 = vadd.f32 %v349_v21, %v331_v19 }
  0xc6   :  { %v385_v23 = vld [vmem:[#allocation2] sm:$0xff] }
  0xc7   :  { %382 = vst [vmem:[#allocation2 + $0x9] sm:$0xff] %v374_v20  ;;  %v398_v24 = vpack.c.bf16 %v374_v20, %v373_v13 }
  0xc8   :  { %660 = vst [vmem:[#allocation2] sm:$0x1] %v3295_v0 }
  0xc9   :  { %626 = vmatmul.bf16.vlgmr.msrb.gmra.mxu0 %v398_v24 }
  0xca   :  { %v368_v25 = vpop.f32.mrf.mxu2  ;;  %v332_v27 = vpop.f32.mrf.mxu0 }
  0xcb   :  { %v369_v26 = vadd.f32 %v368_v25, %v350_v22  ;;  %v333_v29 = vadd.f32 %v3205_v4, %v332_v27  ;;  %v351_v35 = vpop.f32.mrf.mxu1  ;;  %v3061_v4 = vld [vmem:[%s3890_s5 + $0x8] sm:$0xff] }
  0xcc   :  { %888 = vmatpush.bf16.msrb.mxu2 %v3061_v4  ;;  %v3093_v4 = vld [vmem:[#allocation3 + $0x48] sm:$0xff] }
  0xcd   :  { %v375_v28 = vmax.f32 %v369_v26, 0.0  ;;  %v352_v36 = vadd.f32 %v351_v35, %v333_v29 }
  0xce   :  { %v386_v30 = vld [vmem:[#allocation2 + $0x8] sm:$0xff] }
  0xcf   :  { %v393_v31 = vld [vmem:[#allocation2 + $0x2] sm:$0xff]  ;;  %v394_v32 = vld [vmem:[#allocation2 + $0xa] sm:$0xff]  ;;  %383 = vst [vmem:[#allocation2 + $0x19] sm:$0xff] %v375_v28  ;;  %v397_v33 = vpack.c.bf16 %v386_v30, %v385_v23 }
  0xd0   :  { %v399_v34 = vpack.c.bf16 %v394_v32, %v393_v31  ;;  %662 = vst [vmem:[#allocation2 + $0x11] sm:$0x1] %v3295_v0  ;;  %889 = vmatpush.bf16.msrb.mxu2 %v3060_v6  ;;  %v3102_v6 = vld [vmem:[#allocation3 + $0x90] sm:$0xff] }
  0xd1   :  { %607 = vmatmul.bf16.vlgmr.msra.gmra.mxu3 %v397_v33 }
  0xd2   :  { %645 = vmatmul.bf16.vlgmr.msrb.gmra.mxu1 %v399_v34  ;;  %v370_v37 = vpop.f32.mrf.mxu2  ;;  %1203 = vmatpush.bf16.msra.mxu3 %v3107_v54 }
  0xd3   :  { %v371_v38 = vadd.f32 %v370_v37, %v352_v36 }
  0xd4   :  { %1184 = vmatpush.bf16.msra.mxu2 %v3099_v51 }
  0xd5   :  { %v376_v39 = vmax.f32 %v371_v38, 0.0 }
  0xd6   :  { %v387_v40 = vld [vmem:[#allocation2 + $0x18] sm:$0xff]  ;;  %1204 = vmatpush.bf16.msra.mxu3 %v3106_v57  ;;  %v3122_v57 = vld [vmem:[#allocation6 + $0x70] sm:$0xff] }
  0xd7   :  { %384 = vst [vmem:[#allocation2 + $0x21] sm:$0xff] %v376_v39  ;;  %v401_v41 = vpack.c.bf16 %v376_v39, %v375_v28 }
  0xd8   :  { %661 = vst [vmem:[#allocation2 + $0x18] sm:$0x1] %v3295_v0  ;;  %1185 = vmatpush.bf16.msra.mxu2 %v3098_v52 }
  0xd9   :  { %631 = vmatmul.bf16.gmra.mxu0 %v401_v41 }
  0xda   :  { %1205 = vmatpush.bf16.msra.mxu3 %v3105_v60  ;;  %v3130_v60 = vld [vmem:[#allocation6 + $0xb0] sm:$0xff] }
  0xdc   :  { %1186 = vmatpush.bf16.msra.mxu2 %v3097_v55 }
  0xde   :  { %v388_v42 = vld [vmem:[#allocation2 + $0x20] sm:$0xff]  ;;  %1206 = vmatpush.bf16.msra.mxu3 %v3104_v63  ;;  %v3129_v63 = vld [vmem:[#allocation6 + $0xa8] sm:$0xff] }
  0xdf   :  { %v395_v43 = vld [vmem:[#allocation2 + $0x1a] sm:$0xff]  ;;  %v396_v44 = vld [vmem:[#allocation2 + $0x22] sm:$0xff]  ;;  %v400_v45 = vpack.c.bf16 %v388_v42, %v387_v40 }
  0xe0   :  { %v402_v46 = vpack.c.bf16 %v396_v44, %v395_v43  ;;  %663 = vst [vmem:[#allocation2 + $0x29] sm:$0x1] %v3295_v0  ;;  %1187 = vmatpush.bf16.msra.mxu2 %v3096_v58  ;;  %v3115_v58 = vld [vmem:[#allocation6 + $0x38] sm:$0xff] }
  0xe1   :  { %612 = vmatmul.bf16.gmra.mxu3 %v400_v45  ;;  %1448 = vmatpush.bf16.msrb.mxu0 %v3115_v58 }
  0xe2   :  { %650 = vmatmul.bf16.gmra.mxu1 %v402_v46  ;;  %1207 = vmatpush.bf16.msra.mxu3 %v3103_v3  ;;  %v3112_v3 = vld [vmem:[#allocation6 + $0x20] sm:$0xff] }
  0xe4   :  { %1188 = vmatpush.bf16.msra.mxu2 %v3095_v61  ;;  %v3114_v61 = vld [vmem:[#allocation6 + $0x30] sm:$0xff] }
  0xe5   :  { %1449 = vmatpush.bf16.msrb.mxu0 %v3114_v61 }
  0xe6   :  { %1208 = vmatpush.bf16.msra.mxu3 %v3102_v6  ;;  %v3111_v6 = vld [vmem:[#allocation6 + $0x18] sm:$0xff] }
  0xe8   :  { %1189 = vmatpush.bf16.msra.mxu2 %v3094_v1  ;;  %v3113_v1 = vld [vmem:[#allocation6 + $0x28] sm:$0xff] }
  0xe9   :  { %1450 = vmatpush.bf16.msrb.mxu0 %v3113_v1 }
  0xec   :  { %1190 = vmatpush.bf16.msra.mxu2 %v3093_v4  ;;  %v3118_v4 = vld [vmem:[#allocation6 + $0x50] sm:$0xff] }
  0xed   :  { %1451 = vmatpush.bf16.msrb.mxu0 %v3112_v3 }
  0xf0   :  { %1191 = vmatpush.bf16.msra.mxu2 %v3092_v7  ;;  %v3117_v7 = vld [vmem:[#allocation6 + $0x48] sm:$0xff] }
  0xf1   :  { %1452 = vmatpush.bf16.msrb.mxu0 %v3111_v6  ;;  %v3136_v6 = vld [vmem:[%s3896_s11 + $0x20] sm:$0xff] }
 0x146   :  { %v627_v8 = vpop.f32.mrf.mxu0 }
 0x14e   :  { %v629_v15 = vpop.f32.mrf.mxu0 }
 0x14f   :  { %v646_v10 = vpop.f32.mrf.mxu1 }
 0x154   :  { %v608_v11 = vpop.f32.mrf.mxu3 }
 0x155   :  { %v609_v12 = vadd.f32 %v3206_v9, %v608_v11  ;;  %v3100_v11 = vld [vmem:[#allocation3 + $0x80] sm:$0xff] }
 0x156   :  { %v632_v23 = vpop.f32.mrf.mxu0 }
 0x157   :  { %v628_v13 = vadd.f32 %v627_v8, %v609_v12  ;;  %v648_v17 = vpop.f32.mrf.mxu1  ;;  %v3085_v8 = vld [vmem:[#allocation3 + $0x8] sm:$0xff] }
 0x158   :  { %1171 = vmatpush.bf16.msra.mxu1 %v3085_v8  ;;  %v3126_v8 = vld [vmem:[#allocation6 + $0x90] sm:$0xff] }
 0x159   :  { %v647_v14 = vadd.f32 %v646_v10, %v628_v13  ;;  %v3084_v10 = vld [vmem:[#allocation3] sm:$0xff]  ;;  %v3207_v13 = vld [vmem:[%s3891_s6] ss:$0 sm:$0xff] }
 0x15b   :  { %v656_v16 = vmax.f32 %v647_v14, 0.0 }
 0x15c   :  { %v610_v18 = vpop.f32.mrf.mxu3  ;;  %1172 = vmatpush.bf16.msra.mxu1 %v3084_v10  ;;  %v3116_v10 = vld [vmem:[#allocation6 + $0x40] sm:$0xff] }
 0x15d   :  { %664 = vst [vmem:[#allocation2 + $0x1] sm:$0xff] %v656_v16  ;;  %v611_v19 = vadd.f32 %v3206_v9, %v610_v18 }
 0x15e   :  { %v634_v39 = vpop.f32.mrf.mxu0 }
 0x15f   :  { %v630_v20 = vadd.f32 %v629_v15, %v611_v19  ;;  %v651_v28 = vpop.f32.mrf.mxu1 }
 0x160   :  { %1467 = vmatpush.bf16.msrb.mxu1 %v3123_v56 }
 0x161   :  { %v649_v21 = vadd.f32 %v648_v17, %v630_v20 }
 0x163   :  { %v657_v22 = vmax.f32 %v649_v21, 0.0 }
 0x164   :  { %v613_v24 = vpop.f32.mrf.mxu3  ;;  %v668_v26 = vld [vmem:[#allocation2] sm:$0xff]  ;;  %1468 = vmatpush.bf16.msrb.mxu1 %v3122_v57 }
 0x165   :  { %665 = vst [vmem:[#allocation2 + $0x9] sm:$0xff] %v657_v22  ;;  %v614_v25 = vadd.f32 %v3206_v9, %v613_v24  ;;  %v681_v27 = vpack.c.bf16 %v657_v22, %v656_v16 }
 0x166   :  { %943 = vst [vmem:[#allocation2] sm:$0x3] %v3295_v0 }
 0x167   :  { %v633_v29 = vadd.f32 %v632_v23, %v614_v25  ;;  %909 = vmatmul.bf16.vlgmr.msrb.gmra.mxu3 %v681_v27  ;;  %v653_v41 = vpop.f32.mrf.mxu1  ;;  %v3131_v25 = vld [vmem:[#allocation6 + $0xb8] sm:$0xff] }
 0x168   :  { %1469 = vmatpush.bf16.msrb.mxu1 %v3121_v59 }
 0x169   :  { %v652_v30 = vadd.f32 %v651_v28, %v633_v29 }
 0x16b   :  { %v658_v31 = vmax.f32 %v652_v30, 0.0 }
 0x16c   :  { %v615_v32 = vpop.f32.mrf.mxu3  ;;  %v669_v33 = vld [vmem:[#allocation2 + $0x8] sm:$0xff]  ;;  %1470 = vmatpush.bf16.msrb.mxu1 %v3120_v62 }
 0x16d   :  { %v676_v34 = vld [vmem:[#allocation2 + $0x2] sm:$0xff]  ;;  %v677_v35 = vld [vmem:[#allocation2 + $0xa] sm:$0xff]  ;;  %666 = vst [vmem:[#allocation2 + $0x19] sm:$0xff] %v658_v31  ;;  %v616_v36 = vadd.f32 %v3206_v9, %v615_v32  ;;  %v680_v37 = vpack.c.bf16 %v669_v33, %v668_v26  ;;  %v3101_v9 = vld [vmem:[#allocation3 + $0x88] sm:$0xff] }
 0x16e   :  { %v682_v38 = vpack.c.bf16 %v677_v35, %v676_v34  ;;  %1209 = vmatpush.bf16.msra.mxu3 %v3101_v9  ;;  %v3110_v9 = vld [vmem:[#allocation6 + $0x10] sm:$0xff] }
 0x16f   :  { %v635_v40 = vadd.f32 %v634_v39, %v616_v36  ;;  %890 = vmatmul.bf16.vlgmr.msrb.gmra.mxu2 %v680_v37  ;;  %1453 = vmatpush.bf16.msrb.mxu0 %v3110_v9  ;;  %v3160_v9 = vld [vmem:[%s3896_s11 + $0xe0] sm:$0xff] }
 0x170   :  { %928 = vmatmul.bf16.vlgmr.msra.gmra.mxu0 %v682_v38  ;;  %1486 = vmatpush.bf16.msrb.mxu2 %v3131_v25 }
 0x171   :  { %v654_v42 = vadd.f32 %v653_v41, %v635_v40  ;;  %1471 = vmatpush.bf16.msrb.mxu1 %v3119_v2 }
 0x172   :  { %1210 = vmatpush.bf16.msra.mxu3 %v3100_v11  ;;  %v3125_v11 = vld [vmem:[#allocation6 + $0x88] sm:$0xff] }
 0x173   :  { %v659_v43 = vmax.f32 %v654_v42, 0.0 }
 0x174   :  { %v670_v44 = vld [vmem:[#allocation2 + $0x18] sm:$0xff]  ;;  %1487 = vmatpush.bf16.msrb.mxu2 %v3130_v60 }
 0x175   :  { %667 = vst [vmem:[#allocation2 + $0x21] sm:$0xff] %v659_v43  ;;  %v684_v45 = vpack.c.bf16 %v659_v43, %v658_v31  ;;  %1472 = vmatpush.bf16.msrb.mxu1 %v3118_v4 }
 0x176   :  { %944 = vst [vmem:[#allocation2 + $0x18] sm:$0x3] %v3295_v0 }
 0x177   :  { %914 = vmatmul.bf16.gmra.mxu3 %v684_v45 }
 0x178   :  { %1488 = vmatpush.bf16.msrb.mxu2 %v3129_v63 }
 0x179   :  { %1473 = vmatpush.bf16.msrb.mxu1 %v3117_v7  ;;  %v3144_v7 = vld [vmem:[%s3896_s11 + $0x60] sm:$0xff] }
 0x17c   :  { %v671_v46 = vld [vmem:[#allocation2 + $0x20] sm:$0xff] }
 0x17d   :  { %v678_v47 = vld [vmem:[#allocation2 + $0x1a] sm:$0xff]  ;;  %v679_v48 = vld [vmem:[#allocation2 + $0x22] sm:$0xff]  ;;  %v683_v49 = vpack.c.bf16 %v671_v46, %v670_v44  ;;  %1474 = vmatpush.bf16.msrb.mxu1 %v3116_v10 }
 0x17e   :  { %v685_v50 = vpack.c.bf16 %v679_v48, %v678_v47  ;;  %v3135_v10 = vld [vmem:[%s3896_s11 + $0x18] sm:$0xff] }
 0x17f   :  { %895 = vmatmul.bf16.gmra.mxu2 %v683_v49 }
 0x180   :  { %933 = vmatmul.bf16.gmra.mxu0 %v685_v50 }
 0x1ea   :  { %v910_v12 = vpop.f32.mrf.mxu3 }
 0x1ed   :  { %v929_v14 = vpop.f32.mrf.mxu0 }
 0x1f2   :  { %v891_v15 = vpop.f32.mrf.mxu2  ;;  %v912_v19 = vpop.f32.mrf.mxu3 }
 0x1f3   :  { %v892_v16 = vadd.f32 %v3207_v13, %v891_v15  ;;  %v3208_v15 = vld [vmem:[%s3893_s8] ss:$0 sm:$0xff] }
 0x1f5   :  { %v911_v17 = vadd.f32 %v910_v12, %v892_v16  ;;  %v931_v21 = vpop.f32.mrf.mxu0  ;;  %v3109_v12 = vld [vmem:[#allocation6 + $0x8] sm:$0xff] }
 0x1f6   :  { %1454 = vmatpush.bf16.msrb.mxu0 %v3109_v12  ;;  %v3151_v12 = vld [vmem:[%s3896_s11 + $0x98] sm:$0xff] }
 0x1f7   :  { %v930_v18 = vadd.f32 %v929_v14, %v911_v17  ;;  %v3108_v14 = vld [vmem:[#allocation6] sm:$0xff] }
 0x1f9   :  { %v939_v20 = vmax.f32 %v930_v18, 0.0 }
 0x1fa   :  { %v893_v22 = vpop.f32.mrf.mxu2  ;;  %v915_v29 = vpop.f32.mrf.mxu3  ;;  %1455 = vmatpush.bf16.msrb.mxu0 %v3108_v14  ;;  %v3134_v14 = vld [vmem:[%s3896_s11 + $0x10] sm:$0xff] }
 0x1fb   :  { %947 = vst [vmem:[#allocation2 + $0x2] sm:$0xff] %v939_v20  ;;  %v894_v23 = vadd.f32 %v3207_v13, %v893_v22 }
 0x1fd   :  { %v913_v24 = vadd.f32 %v912_v19, %v894_v23  ;;  %v934_v33 = vpop.f32.mrf.mxu0 }
 0x1ff   :  { %v932_v26 = vadd.f32 %v931_v21, %v913_v24 }
 0x201   :  { %v940_v27 = vmax.f32 %v932_v26, 0.0 }
 0x202   :  { %v896_v28 = vpop.f32.mrf.mxu2  ;;  %v951_v31 = vld [vmem:[#allocation2] sm:$0xff]  ;;  %v917_v44 = vpop.f32.mrf.mxu3 }
 0x203   :  { %948 = vst [vmem:[#allocation2 + $0xa] sm:$0xff] %v940_v27  ;;  %v897_v30 = vadd.f32 %v3207_v13, %v896_v28  ;;  %v964_v32 = vpack.c.bf16 %v940_v27, %v939_v20  ;;  %v3139_v27 = vld [vmem:[%s3896_s11 + $0x38] sm:$0xff] }
 0x204   :  { %1226 = vst [vmem:[#allocation2] sm:$0x1] %v3295_v0  ;;  %v3147_v28 = vld [vmem:[%s3896_s11 + $0x78] sm:$0xff]  ;;  %2068 = vmatpush.bf16.msrb.mxu3 %v3139_v27 }
 0x205   :  { %v916_v34 = vadd.f32 %v915_v29, %v897_v30  ;;  %1192 = vmatmul.bf16.vlgmr.msra.gmra.mxu2 %v964_v32  ;;  %v936_v46 = vpop.f32.mrf.mxu0  ;;  %v3155_v29 = vld [vmem:[%s3896_s11 + $0xb8] sm:$0xff]  ;;  %2081 = vmatpush.bf16.msra.mxu0 %v3147_v28 }
 0x206   :  { %v3179_v27 = vld [vmem:[%s3896_s11 + $0x178] sm:$0xff] }
 0x207   :  { %v935_v35 = vadd.f32 %v934_v33, %v916_v34  ;;  %v3138_v33 = vld [vmem:[%s3896_s11 + $0x30] sm:$0xff]  ;;  %v3187_v28 = vld [vmem:[%s3896_s11 + $0x1b8] sm:$0xff] }
 0x208   :  { %v3146_v34 = vld [vmem:[%s3896_s11 + $0x70] sm:$0xff]  ;;  %2069 = vmatpush.bf16.msrb.mxu3 %v3138_v33 }
 0x209   :  { %v941_v36 = vmax.f32 %v935_v35, 0.0  ;;  %2082 = vmatpush.bf16.msra.mxu0 %v3146_v34  ;;  %v3194_v33 = vld [vmem:[%s3896_s11 + $0x1f0] sm:$0xff]  ;;  %v3169_v34 = vld [vmem:[%s3896_s11 + $0x128] sm:$0xff] }
 0x20a   :  { %v898_v37 = vpop.f32.mrf.mxu2  ;;  %v952_v38 = vld [vmem:[#allocation2 + $0x8] sm:$0xff] }
 0x20b   :  { %v959_v39 = vld [vmem:[#allocation2 + $0x4] sm:$0xff]  ;;  %v960_v40 = vld [vmem:[#allocation2 + $0xc] sm:$0xff]  ;;  %949 = vst [vmem:[#allocation2 + $0x1a] sm:$0xff] %v941_v36  ;;  %v899_v41 = vadd.f32 %v3207_v13, %v898_v37  ;;  %v963_v42 = vpack.c.bf16 %v952_v38, %v951_v31  ;;  %v3163_v31 = vld [vmem:[%s3896_s11 + $0xf8] sm:$0xff] }
 0x20c   :  { %v965_v43 = vpack.c.bf16 %v960_v40, %v959_v39  ;;  %1228 = vst [vmem:[#allocation2 + $0x11] sm:$0x1] %v3295_v0  ;;  %v3124_v13 = vld [vmem:[#allocation6 + $0x80] sm:$0xff] }
 0x20d   :  { %v918_v45 = vadd.f32 %v917_v44, %v899_v41  ;;  %1173 = vmatmul.bf16.vlgmr.msra.gmra.mxu1 %v963_v42  ;;  %v3162_v37 = vld [vmem:[%s3896_s11 + $0xf0] sm:$0xff]  ;;  %v3137_v42 = vld [vmem:[%s3896_s11 + $0x28] sm:$0xff] }
 0x20e   :  { %1211 = vmatmul.bf16.vlgmr.msra.gmra.mxu3 %v965_v43  ;;  %2094 = vmatpush.bf16.msra.mxu1 %v3155_v29  ;;  %v3145_v43 = vld [vmem:[%s3896_s11 + $0x68] sm:$0xff]  ;;  %v3195_v29 = vld [vmem:[%s3896_s11 + $0x1f8] sm:$0xff] }
 0x20f   :  { %v937_v47 = vadd.f32 %v936_v46, %v918_v45  ;;  %v3153_v44 = vld [vmem:[%s3896_s11 + $0xa8] sm:$0xff]  ;;  %2070 = vmatpush.bf16.msrb.mxu3 %v3137_v42  ;;  %2083 = vmatpush.bf16.msra.mxu0 %v3145_v43  ;;  %v3192_v42 = vld [vmem:[%s3896_s11 + $0x1e0] sm:$0xff] }
 0x210   :  { %v3161_v45 = vld [vmem:[%s3896_s11 + $0xe8] sm:$0xff] }
 0x211   :  { %v942_v48 = vmax.f32 %v937_v47, 0.0 }
 0x212   :  { %v953_v49 = vld [vmem:[#allocation2 + $0x18] sm:$0xff] }
 0x213   :  { %950 = vst [vmem:[#allocation2 + $0x22] sm:$0xff] %v942_v48  ;;  %v967_v50 = vpack.c.bf16 %v942_v48, %v941_v36  ;;  %v3154_v36 = vld [vmem:[%s3896_s11 + $0xb0] sm:$0xff]  ;;  %2071 = vmatpush.bf16.msrb.mxu3 %v3136_v6  ;;  %2084 = vmatpush.bf16.msra.mxu0 %v3144_v7 }
 0x214   :  { %1227 = vst [vmem:[#allocation2 + $0x18] sm:$0x1] %v3295_v0  ;;  %2095 = vmatpush.bf16.msra.mxu1 %v3154_v36  ;;  %v3185_v36 = vld [vmem:[%s3896_s11 + $0x1a8] sm:$0xff] }
 0x215   :  { %1197 = vmatmul.bf16.gmra.mxu2 %v967_v50 }
 0x217   :  { %2072 = vmatpush.bf16.msrb.mxu3 %v3135_v10 }
 0x218   :  { %2096 = vmatpush.bf16.msra.mxu1 %v3153_v44  ;;  %v3167_v44 = vld [vmem:[%s3896_s11 + $0x118] sm:$0xff] }
 0x21a   :  { %v954_v51 = vld [vmem:[#allocation2 + $0x20] sm:$0xff] }
 0x21b   :  { %v961_v52 = vld [vmem:[#allocation2 + $0x1c] sm:$0xff]  ;;  %v962_v53 = vld [vmem:[#allocation2 + $0x24] sm:$0xff]  ;;  %v966_v54 = vpack.c.bf16 %v954_v51, %v953_v49  ;;  %2073 = vmatpush.bf16.msrb.mxu3 %v3134_v14 }
 0x21c   :  { %v968_v55 = vpack.c.bf16 %v962_v53, %v961_v52  ;;  %1229 = vst [vmem:[#allocation2 + $0x29] sm:$0x1] %v3295_v0  ;;  %v3128_v0 = vld [vmem:[#allocation6 + $0xa0] sm:$0xff] }
 0x21d   :  { %1178 = vmatmul.bf16.gmra.mxu1 %v966_v54  ;;  %1489 = vmatpush.bf16.msrb.mxu2 %v3128_v0 }
 0x21e   :  { %1216 = vmatmul.bf16.gmra.mxu3 %v968_v55 }
 0x221   :  { %1490 = vmatpush.bf16.msrb.mxu2 %v3127_v5 }
 0x225   :  { %1491 = vmatpush.bf16.msrb.mxu2 %v3126_v8  ;;  %v3152_v8 = vld [vmem:[%s3896_s11 + $0xa0] sm:$0xff] }
 0x226   :  { %2097 = vmatpush.bf16.msra.mxu1 %v3152_v8 }
 0x229   :  { %1492 = vmatpush.bf16.msrb.mxu2 %v3125_v11  ;;  %v3143_v11 = vld [vmem:[%s3896_s11 + $0x58] sm:$0xff] }
 0x22a   :  { %2085 = vmatpush.bf16.msra.mxu0 %v3143_v11  ;;  %2098 = vmatpush.bf16.msra.mxu1 %v3151_v12 }
 0x22d   :  { %1493 = vmatpush.bf16.msrb.mxu2 %v3124_v13  ;;  %v3159_v13 = vld [vmem:[%s3896_s11 + $0xd8] sm:$0xff] }
 0x231   :  { %2107 = vmatpush.bf16.msra.mxu2 %v3163_v31  ;;  %v3178_v31 = vld [vmem:[%s3896_s11 + $0x170] sm:$0xff] }
 0x235   :  { %2108 = vmatpush.bf16.msra.mxu2 %v3162_v37  ;;  %v3193_v37 = vld [vmem:[%s3896_s11 + $0x1e8] sm:$0xff] }
 0x239   :  { %2109 = vmatpush.bf16.msra.mxu2 %v3161_v45  ;;  %v3175_v45 = vld [vmem:[%s3896_s11 + $0x158] sm:$0xff] }
 0x23d   :  { %2110 = vmatpush.bf16.msra.mxu2 %v3160_v9 }
 0x241   :  { %2111 = vmatpush.bf16.msra.mxu2 %v3159_v13 }
 0x288   :  { %v1193_v16 = vpop.f32.mrf.mxu2 }
 0x28a   :  { %v1174_v17 = vpop.f32.mrf.mxu1 }
 0x28b   :  { %v1175_v18 = vadd.f32 %v3208_v15, %v1174_v17  ;;  %v3158_v17 = vld [vmem:[%s3896_s11 + $0xd0] sm:$0xff] }
 0x28c   :  { %2112 = vmatpush.bf16.msra.mxu2 %v3158_v17 }
 0x28d   :  { %v1194_v19 = vadd.f32 %v1193_v16, %v1175_v18  ;;  %v3150_v16 = vld [vmem:[%s3896_s11 + $0x90] sm:$0xff]  ;;  %v3133_v18 = vld [vmem:[%s3896_s11 + $0x8] sm:$0xff] }
 0x28e   :  { %2099 = vmatpush.bf16.msra.mxu1 %v3150_v16  ;;  %2074 = vmatpush.bf16.msrb.mxu3 %v3133_v18 }
 0x290   :  { %v1195_v23 = vpop.f32.mrf.mxu2 }
 0x291   :  { %v1212_v20 = vpop.f32.mrf.mxu3 }
 0x292   :  { %v1213_v21 = vadd.f32 %v1212_v20, %v1194_v19  ;;  %v1176_v22 = vpop.f32.mrf.mxu1  ;;  %v3141_v19 = vld [vmem:[%s3896_s11 + $0x48] sm:$0xff] }
 0x293   :  { %v1177_v25 = vadd.f32 %v3208_v15, %v1176_v22  ;;  %v3149_v20 = vld [vmem:[%s3896_s11 + $0x88] sm:$0xff]  ;;  %v3132_v22 = vld [vmem:[%s3896_s11] sm:$0xff] }
 0x294   :  { %v1222_v24 = vmax.f32 %v1213_v21, 0.0  ;;  %v3157_v21 = vld [vmem:[%s3896_s11 + $0xc8] sm:$0xff]  ;;  %2100 = vmatpush.bf16.msra.mxu1 %v3149_v20  ;;  %2075 = vmatpush.bf16.msrb.mxu3 %v3132_v22 }
 0x295   :  { %v1196_v26 = vadd.f32 %v1195_v23, %v1177_v25  ;;  %2113 = vmatpush.bf16.msra.mxu2 %v3157_v21  ;;  %v3140_v23 = vld [vmem:[%s3896_s11 + $0x40] sm:$0xff] }
 0x296   :  { %1230 = vst [vmem:[#allocation2 + $0x1] sm:$0xff] %v1222_v24  ;;  %v3156_v25 = vld [vmem:[%s3896_s11 + $0xc0] sm:$0xff] }
 0x298   :  { %v1198_v40 = vpop.f32.mrf.mxu2 }
 0x299   :  { %v1214_v30 = vpop.f32.mrf.mxu3  ;;  %2114 = vmatpush.bf16.msra.mxu2 %v3156_v25 }
 0x29a   :  { %v1215_v32 = vadd.f32 %v1214_v30, %v1196_v26  ;;  %v1179_v35 = vpop.f32.mrf.mxu1  ;;  %v3171_v26 = vld [vmem:[%s3896_s11 + $0x138] sm:$0xff]  ;;  %v3170_v30 = vld [vmem:[%s3896_s11 + $0x130] sm:$0xff] }
 0x29b   :  { %v1180_v39 = vadd.f32 %v3208_v15, %v1179_v35  ;;  %2120 = vmatpush.bf16.msra.mxu3 %v3171_v26  ;;  %v3177_v35 = vld [vmem:[%s3896_s11 + $0x168] sm:$0xff] }
 0x29c   :  { %v1223_v38 = vmax.f32 %v1215_v32, 0.0  ;;  %v3186_v32 = vld [vmem:[%s3896_s11 + $0x1b0] sm:$0xff] }
 0x29d   :  { %v1199_v46 = vadd.f32 %v1198_v40, %v1180_v39  ;;  %v1234_v52 = vld [vmem:[#allocation2] sm:$0xff] }
 0x29e   :  { %1231 = vst [vmem:[#allocation2 + $0x9] sm:$0xff] %v1223_v38  ;;  %v1247_v41 = vpack.c.bf16 %v1223_v38, %v1222_v24  ;;  %v3148_v24 = vld [vmem:[%s3896_s11 + $0x80] sm:$0xff] }
 0x29f   :  { %2101 = vmatpush.bf16.msra.mxu1 %v3148_v24  ;;  %2121 = vmatpush.bf16.msra.mxu3 %v3170_v30  ;;  %v3168_v38 = vld [vmem:[%s3896_s11 + $0x120] sm:$0xff] }
 0x2a0   :  { %1475 = vmatmul.bf16.vlgmr.msrb.gmra.mxu1 %v1247_v41  ;;  %v1200_v58 = vpop.f32.mrf.mxu2  ;;  %v3176_v39 = vld [vmem:[%s3896_s11 + $0x160] sm:$0xff] }
 0x2a1   :  { %v1217_v47 = vpop.f32.mrf.mxu3  ;;  %v3184_v40 = vld [vmem:[%s3896_s11 + $0x1a0] sm:$0xff] }
 0x2a2   :  { %v1218_v48 = vadd.f32 %v1217_v47, %v1199_v46  ;;  %v1181_v49 = vpop.f32.mrf.mxu1  ;;  %v3183_v46 = vld [vmem:[%s3896_s11 + $0x198] sm:$0xff] }
 0x2a3   :  { %v1182_v51 = vadd.f32 %v3208_v15, %v1181_v49  ;;  %v3142_v15 = vld [vmem:[%s3896_s11 + $0x50] sm:$0xff]  ;;  %2146 = vmatpush.bf16.msrb.mxu1 %v3187_v28  ;;  %2122 = vmatpush.bf16.msra.mxu3 %v3169_v34  ;;  %v3191_v47 = vld [vmem:[%s3896_s11 + $0x1d8] sm:$0xff] }
 0x2a4   :  { %v1224_v50 = vmax.f32 %v1218_v48, 0.0  ;;  %2086 = vmatpush.bf16.msra.mxu0 %v3142_v15  ;;  %v3166_v48 = vld [vmem:[%s3896_s11 + $0x110] sm:$0xff] }
 0x2a5   :  { %v1235_v53 = vld [vmem:[#allocation2 + $0x8] sm:$0xff]  ;;  %v1201_v59 = vadd.f32 %v1200_v58, %v1182_v51  ;;  %v3174_v49 = vld [vmem:[%s3896_s11 + $0x150] sm:$0xff]  ;;  %v3209_v58 = vld [vmem:[%s3895_s10] ss:$0 sm:$0xff] }
 0x2a6   :  { %v1242_v54 = vld [vmem:[#allocation2 + $0x2] sm:$0xff]  ;;  %v1243_v55 = vld [vmem:[#allocation2 + $0xa] sm:$0xff]  ;;  %1232 = vst [vmem:[#allocation2 + $0x19] sm:$0xff] %v1224_v50  ;;  %v1246_v56 = vpack.c.bf16 %v1235_v53, %v1234_v52 }
 0x2a7   :  { %v1248_v57 = vpack.c.bf16 %v1243_v55, %v1242_v54  ;;  %2147 = vmatpush.bf16.msrb.mxu1 %v3186_v32  ;;  %2123 = vmatpush.bf16.msra.mxu3 %v3168_v38  ;;  %v3190_v51 = vld [vmem:[%s3896_s11 + $0x1d0] sm:$0xff]  ;;  %v3165_v53 = vld [vmem:[%s3896_s11 + $0x108] sm:$0xff] }
 0x2a8   :  { %1456 = vmatmul.bf16.vlgmr.msrb.gmra.mxu0 %v1246_v56  ;;  %v3173_v54 = vld [vmem:[%s3896_s11 + $0x148] sm:$0xff] }
 0x2a9   :  { %1494 = vmatmul.bf16.vlgmr.msrb.gmra.mxu2 %v1248_v57  ;;  %v1219_v60 = vpop.f32.mrf.mxu3  ;;  %2087 = vmatpush.bf16.msra.mxu0 %v3141_v19  ;;  %v3181_v56 = vld [vmem:[%s3896_s11 + $0x188] sm:$0xff] }
 0x2aa   :  { %v1220_v61 = vadd.f32 %v1219_v60, %v1201_v59  ;;  %2159 = vmatpush.bf16.msrb.mxu2 %v3195_v29  ;;  %v3189_v57 = vld [vmem:[%s3896_s11 + $0x1c8] sm:$0xff]  ;;  %v3164_v60 = vld [vmem:[%s3896_s11 + $0x100] sm:$0xff] }
 0x2ab   :  { %2148 = vmatpush.bf16.msrb.mxu1 %v3185_v36  ;;  %2124 = vmatpush.bf16.msra.mxu3 %v3167_v44 }
 0x2ac   :  { %v1225_v62 = vmax.f32 %v1220_v61, 0.0  ;;  %v3172_v61 = vld [vmem:[%s3896_s11 + $0x140] sm:$0xff] }
 0x2ad   :  { %v1236_v1 = vld [vmem:[#allocation2 + $0x18] sm:$0xff]  ;;  %2088 = vmatpush.bf16.msra.mxu0 %v3140_v23 }
 0x2ae   :  { %1233 = vst [vmem:[#allocation2 + $0x21] sm:$0xff] %v1225_v62  ;;  %v1250_v63 = vpack.c.bf16 %v1225_v62, %v1224_v50  ;;  %2160 = vmatpush.bf16.msrb.mxu2 %v3194_v33  ;;  %v3182_v50 = vld [vmem:[%s3896_s11 + $0x190] sm:$0xff]  ;;  %v3180_v62 = vld [vmem:[%s3896_s11 + $0x180] sm:$0xff] }
 0x2af   :  { %2149 = vmatpush.bf16.msrb.mxu1 %v3184_v40  ;;  %2125 = vmatpush.bf16.msra.mxu3 %v3166_v48 }
 0x2b0   :  { %1480 = vmatmul.bf16.gmra.mxu1 %v1250_v63  ;;  %v3188_v63 = vld [vmem:[%s3896_s11 + $0x1c0] sm:$0xff] }
 0x2b1   :  { %2133 = vmatpush.bf16.msrb.mxu0 %v3179_v27 }
 0x2b2   :  { %2161 = vmatpush.bf16.msrb.mxu2 %v3193_v37 }
 0x2b3   :  { %2150 = vmatpush.bf16.msrb.mxu1 %v3183_v46  ;;  %2126 = vmatpush.bf16.msra.mxu3 %v3165_v53  ;;  %v3197_v53 = vld [vmem:[%s3898_s13 + $0x8] sm:$0xff] }
 0x2b5   :  { %v1237_v2 = vld [vmem:[#allocation2 + $0x20] sm:$0xff]  ;;  %2134 = vmatpush.bf16.msrb.mxu0 %v3178_v31 }
 0x2b6   :  { %v1244_v0 = vld [vmem:[#allocation2 + $0x1a] sm:$0xff]  ;;  %v1245_v3 = vld [vmem:[#allocation2 + $0x22] sm:$0xff]  ;;  %v1249_v4 = vpack.c.bf16 %v1237_v2, %v1236_v1  ;;  %2162 = vmatpush.bf16.msrb.mxu2 %v3192_v42 }
 0x2b7   :  { %v1251_v5 = vpack.c.bf16 %v1245_v3, %v1244_v0  ;;  %2151 = vmatpush.bf16.msrb.mxu1 %v3182_v50  ;;  %2127 = vmatpush.bf16.msra.mxu3 %v3164_v60 }
 0x2b8   :  { %1461 = vmatmul.bf16.gmra.mxu0 %v1249_v4 }
 0x2b9   :  { %1499 = vmatmul.bf16.gmra.mxu2 %v1251_v5  ;;  %2135 = vmatpush.bf16.msrb.mxu0 %v3177_v35 }
 0x2ba   :  { %2163 = vmatpush.bf16.msrb.mxu2 %v3191_v47 }
 0x2bb   :  { %2152 = vmatpush.bf16.msrb.mxu1 %v3181_v56 }
 0x2bd   :  { %2136 = vmatpush.bf16.msrb.mxu0 %v3176_v39 }
 0x2be   :  { %2164 = vmatpush.bf16.msrb.mxu2 %v3190_v51 }
 0x2bf   :  { %2153 = vmatpush.bf16.msrb.mxu1 %v3180_v62 }
 0x2c1   :  { %2137 = vmatpush.bf16.msrb.mxu0 %v3175_v45 }
 0x2c2   :  { %2165 = vmatpush.bf16.msrb.mxu2 %v3189_v57  ;;  %v3198_v57 = vld [vmem:[%s3900_s15] sm:$0xff] }
 0x2c5   :  { %2138 = vmatpush.bf16.msrb.mxu0 %v3174_v49 }
 0x2c6   :  { %2166 = vmatpush.bf16.msrb.mxu2 %v3188_v63 }
 0x2c9   :  { %2139 = vmatpush.bf16.msrb.mxu0 %v3173_v54  ;;  %v3196_v54 = vld [vmem:[%s3898_s13] sm:$0xff] }
 0x2cd   :  { %2140 = vmatpush.bf16.msrb.mxu0 %v3172_v61 }
 0x31d   :  { %v1476_v41 = vpop.f32.mrf.mxu1 }
 0x325   :  { %v1457_v43 = vpop.f32.mrf.mxu0  ;;  %v1478_v55 = vpop.f32.mrf.mxu1 }
 0x326   :  { %v1458_v1 = vadd.f32 %v3209_v58, %v1457_v43 }
 0x328   :  { %v1477_v0 = vadd.f32 %v1476_v41, %v1458_v1 }
 0x32c   :  { %v1495_v52 = vpop.f32.mrf.mxu2 }
 0x32d   :  { %v1459_v59 = vpop.f32.mrf.mxu0  ;;  %v1481_v5 = vpop.f32.mrf.mxu1  ;;  %v1496_v6 = vadd.f32 %v1495_v52, %v1477_v0 }
 0x32e   :  { %v1460_v17 = vadd.f32 %v3209_v58, %v1459_v59 }
 0x32f   :  { %v1505_v8 = vmax.f32 %v1496_v6, 0.0 }
 0x330   :  { %v1479_v33 = vadd.f32 %v1478_v55, %v1460_v17 }
 0x331   :  { %v1515_v14 = vrot.slane %v1505_v8, 2  ;;  %v1519_v15 = vrot.slane %v1505_v8, 4  ;;  %v1523_v16 = vrot.slane %v1505_v8, 6 }
 0x334   :  { %v1497_v2 = vpop.f32.mrf.mxu2 }
 0x335   :  { %v1462_v3 = vpop.f32.mrf.mxu0  ;;  %v1483_v22 = vpop.f32.mrf.mxu1  ;;  %v1498_v35 = vadd.f32 %v1497_v2, %v1479_v33 }
 0x336   :  { %v1463_v4 = vadd.f32 %v3209_v58, %v1462_v3 }
 0x337   :  { %v1506_v37 = vmax.f32 %v1498_v35, 0.0 }
 0x338   :  { %v1482_v7 = vadd.f32 %v1481_v5, %v1463_v4 }
 0x339   :  { %v1532_v42 = vrot.slane %v1506_v37, 2  ;;  %v1536_v43 = vrot.slane %v1506_v37, 4  ;;  %v1540_v44 = vrot.slane %v1506_v37, 6 }
 0x33c   :  { %v1500_v9 = vpop.f32.mrf.mxu2 }
 0x33d   :  { %v1501_v10 = vadd.f32 %v1500_v9, %v1482_v7  ;;  %v1464_v11 = vpop.f32.mrf.mxu0 }
 0x33e   :  { %v1465_v13 = vadd.f32 %v3209_v58, %v1464_v11  ;;  %v3210_v58 = vld [vmem:[%s3897_s12] ss:$0 sm:$0xff] }
 0x33f   :  { %v1507_v12 = vmax.f32 %v1501_v10, 0.0 }
 0x340   :  { %v1484_v23 = vadd.f32 %v1483_v22, %v1465_v13 }
 0x341   :  { %v1511_v18 = vrot.slane %v1507_v12, 7  ;;  %v1516_v19 = vrot.slane %v1507_v12, 1  ;;  %v1520_v20 = vrot.slane %v1507_v12, 3  ;;  %v1524_v21 = vrot.slane %v1507_v12, 5 }
 0x343   :  { %v1513_v24 = vsel %vm1512_vm0, %v1511_v18, %v1505_v8  ;;  %v1517_v25 = vsel %vm1512_vm0, %v1516_v19, %v1515_v14  ;;  %v1521_v26 = vsel %vm1512_vm0, %v1520_v20, %v1519_v15  ;;  %v1525_v27 = vsel %vm1512_vm0, %v1524_v21, %v1523_v16  ;;  %v3211_v19 = vld [vmem:[%s3899_s14] ss:$0 sm:$0xff] }
 0x344   :  { %v1502_v28 = vpop.f32.mrf.mxu2  ;;  %v1544_v29 = vpack.c.bf16 %v1513_v24, %v1513_v24  ;;  %v1545_v30 = vpack.c.bf16 %v1517_v25, %v1517_v25  ;;  %v1546_v31 = vpack.c.bf16 %v1521_v26, %v1521_v26  ;;  %v1547_v32 = vpack.c.bf16 %v1525_v27, %v1525_v27  ;;  %v3212_v25 = vld [vmem:[%s3901_s16] ss:$0 sm:$0xff] }
 0x345   :  { %v1503_v34 = vadd.f32 %v1502_v28, %v1484_v23 }
 0x346   :  { %2076 = vmatmul.bf16.vlgmr.msrb.gmra.mxu3 %v1544_v29  ;;  %2089 = vmatmul.bf16.vlgmr.msra.gmra.mxu0 %v1545_v30 }
 0x347   :  { %2102 = vmatmul.bf16.vlgmr.msra.gmra.mxu1 %v1546_v31  ;;  %2115 = vmatmul.bf16.vlgmr.msra.gmra.mxu2 %v1547_v32  ;;  %v1508_v36 = vmax.f32 %v1503_v34, 0.0 }
 0x348   :  { %2204 = vmatpush.bf16.msrb.mxu3 %v3197_v53 }
 0x349   :  { %v1529_v38 = vrot.slane %v1508_v36, 7  ;;  %v1533_v39 = vrot.slane %v1508_v36, 1  ;;  %v1537_v40 = vrot.slane %v1508_v36, 3  ;;  %v1541_v41 = vrot.slane %v1508_v36, 5 }
 0x34b   :  { %v1530_v45 = vsel %vm1512_vm0, %v1529_v38, %v1506_v37  ;;  %v1534_v46 = vsel %vm1512_vm0, %v1533_v39, %v1532_v42  ;;  %v1538_v47 = vsel %vm1512_vm0, %v1537_v40, %v1536_v43  ;;  %v1542_v48 = vsel %vm1512_vm0, %v1541_v41, %v1540_v44 }
 0x34c   :  { %v1548_v49 = vpack.c.bf16 %v1530_v45, %v1530_v45  ;;  %v1549_v50 = vpack.c.bf16 %v1534_v46, %v1534_v46  ;;  %v1550_v51 = vpack.c.bf16 %v1538_v47, %v1538_v47  ;;  %v1551_v52 = vpack.c.bf16 %v1542_v48, %v1542_v48  ;;  %2205 = vmatpush.bf16.msrb.mxu3 %v3196_v54 }
 0x356   :  { %2128 = vmatmul.bf16.vlgmr.msra.gmra.mxu3 %v1548_v49  ;;  %2141 = vmatmul.bf16.vlgmr.msrb.gmra.mxu0 %v1549_v50 }
 0x357   :  { %2154 = vmatmul.bf16.vlgmr.msrb.gmra.mxu1 %v1550_v51  ;;  %2167 = vmatmul.bf16.vlgmr.msrb.gmra.mxu2 %v1551_v52 }
 0x358   :  { %2236 = vmatpush.bf16.msra.mxu3 %v3198_v57 }
 0x3c3   :  { %v2090_v55 = vpop.f32.mrf.mxu0 }
 0x3c4   :  { %v2103_v56 = vpop.f32.mrf.mxu1 }
 0x3c9   :  { %v2077_v59 = vpop.f32.mrf.mxu3 }
 0x3ca   :  { %v2116_v60 = vpop.f32.mrf.mxu2  ;;  %v2078_v62 = vadd.f32 %v3210_v58, %v2077_v59 }
 0x3cb   :  { %v2092_v61 = vpop.f32.mrf.mxu0 }
 0x3cc   :  { %v2105_v63 = vpop.f32.mrf.mxu1  ;;  %v2091_v1 = vadd.f32 %v2090_v55, %v2078_v62 }
 0x3ce   :  { %v2104_v4 = vadd.f32 %v2103_v56, %v2091_v1 }
 0x3d0   :  { %v2117_v6 = vadd.f32 %v2116_v60, %v2104_v4 }
 0x3d1   :  { %v2079_v2 = vpop.f32.mrf.mxu3 }
 0x3d2   :  { %v2118_v0 = vpop.f32.mrf.mxu2 }
 0x3d3   :  { %v2142_v3 = vpop.f32.mrf.mxu0 }
 0x3d4   :  { %v2155_v5 = vpop.f32.mrf.mxu1 }
 0x3d9   :  { %v2129_v7 = vpop.f32.mrf.mxu3 }
 0x3da   :  { %v2130_v8 = vadd.f32 %v2129_v7, %v2117_v6  ;;  %v2168_v9 = vpop.f32.mrf.mxu2 }
 0x3db   :  { %v2144_v10 = vpop.f32.mrf.mxu0 }
 0x3dc   :  { %v2143_v11 = vadd.f32 %v2142_v3, %v2130_v8  ;;  %v2157_v12 = vpop.f32.mrf.mxu1 }
 0x3de   :  { %v2156_v13 = vadd.f32 %v2155_v5, %v2143_v11 }
 0x3e0   :  { %v2169_v14 = vadd.f32 %v2168_v9, %v2156_v13 }
 0x3e1   :  { %v2131_v15 = vpop.f32.mrf.mxu3 }
 0x3e2   :  { %v2172_v16 = vmax.f32 %v2169_v14, 0.0  ;;  %v2170_v17 = vpop.f32.mrf.mxu2 }
 0x3e4   :  { %v2173_v18 = vpack.c.bf16 %v2172_v16, %v2172_v16 }
 0x3e6   :  { %3006 = vmatmul.msk.bf16.vlgmr.msrb.gmra.mxu3 %vm2194_vm1, %v2173_v18 }
 0x469   :  { %v2207_v20 = vpop.f32.mrf.mxu3 }
 0x46a   :  { %v2208_v21 = vadd.f32 %v3211_v19, %v2207_v20 }
 0x46c   :  { %v2211_v22 = vmax.f32 %v2208_v21, 0.0 }
 0x46e   :  { %v2212_v23 = vpack.c.bf16 %v2211_v22, %v2211_v22 }
 0x470   :  { %3011 = vmatmul.msk.bf16.vlgmr.msra.gmra.mxu3 %vm2225_vm2, %v2212_v23 }
 0x471   :  { %v2209_v24 = vpop.f32.mrf.mxu3 }
 0x4f3   :  { %v2238_v26 = vpop.f32.mrf.mxu3 }
 0x4f4   :  { %v2239_v27 = vadd.f32 %v3212_v25, %v2238_v26 }
 0x4f6   :  { %2243 = vst.msk [vmem:[#allocation8] sm:$0x3] %vm2242_vm3, %v2239_v27 }
 0x4f7   :  { %2254 = dma.vmem_to_hbm [thread:$0]  %s2250_s22, 32, %s2252_s25, [#allocation5]  }
 0x4fb   :  { %v2240_v28 = vpop.f32.mrf.mxu3 }
 0x4fc   :  { %3289 = dma.done.wait [#allocation5], 32  }
 0x4fd   :  { %3290 = vsyncadd [#allocation5], 4294967264 }
 0x4fe   :  { %2259 = vsyncpa [#allocation4], 1 }
 0x4ff   :  { %2260 = vsyncpa [#allocation7], 1 }
 0x500   :  { %2261 = vsyncpa [#allocation5], 1 }

</bundles_post_ra>
